<compile_context>
chip_gen: v5e
topology: v5e:2x2
jax: 0.10.0
libtpu: 0.0.40
codegen_flags: <defaults>
</compile_context>

<pallas_src>
import jax
import jax.numpy as jnp
from jax import lax
from jax.experimental import pallas as pl
from jax.experimental.pallas import tpu as pltpu

BT = 8  # sublane tile: batch rows handled per grid step


def _make_lstm_kernel(num_layers: int, seq_len: int, hidden: int):
    """Builds the Pallas kernel.

    Kernel ref order (per grid step = one batch sublane-tile):
      x_ref,                                   # (T*BT, in)   time-major rows
      [w_ih_ref, w_hh_ref, b_ref] * L,         # per-layer weights (see wrapper)
      w_fc_ref, b_fc_ref,                      # fc head (lane-padded, row-stacked)
      out_ref,                                 # (BT, out_pad)
      pre0_ref                                 # VMEM scratch (T*BT, 4H)
    """
    H = hidden
    G4 = 4 * H
    L = num_layers
    T = seq_len

    def kernel(*refs):
        x_ref = refs[0]
        layer_refs = refs[1:1 + 3 * L]
        w_fc_ref, b_fc_ref, out_ref, pre0_ref = refs[1 + 3 * L:]

        w_ih = [layer_refs[3 * l + 0] for l in range(L)]
        w_hh = [layer_refs[3 * l + 1] for l in range(L)]
        bias = [layer_refs[3 * l + 2] for l in range(L)]

        # Hoisted lane constants (broadcast_in_dim is not CSE'd -> build once).
        lane = lax.broadcasted_iota(jnp.int32, (BT, G4), 1)
        g_mask = (lane >= 2 * H) & (lane < 3 * H)
        # sigmoid(x) = 0.5*(tanh(x/2)+1): prescale i/f/o blocks by 0.5 so one
        # whole-vreg tanh serves all four gates.
        prescale = jnp.where(g_mask, jnp.float32(1.0), jnp.float32(0.5))

        # ---- Layer-0 input projection, all timesteps at once (off the
        # recurrence critical path). ----
        pre0_ref[...] = (
            jnp.dot(x_ref[...], w_ih[0][...], preferred_element_type=jnp.float32)
            + bias[0][...]
        )

        def cell(gates, c_prev):
            """LSTM cell in the lane-dense [i|f|g|o] layout.

            Real cell state lives in lane block 1 of c, real hidden state in
            lane block 3 of h; the other lane blocks hold junk that only ever
            meets zero-padded weight rows downstream (contributes exactly 0).
            """
            t_all = jnp.tanh(gates * prescale)                      # 1 EUP push
            act = jnp.where(g_mask, t_all, 0.5 * (t_all + 1.0))     # [I|F|G|O]
            r = jnp.roll(act, 2 * H, axis=1)                        # [G|O|I|F]
            ig = act * r                                            # I*G (block 0)
            fcp = act * c_prev                                      # F*c (block 1)
            c_new = fcp + jnp.roll(ig, H, axis=1)                   # blk1: f*c+i*g
            h_new = act * jnp.roll(jnp.tanh(c_new), 2 * H, axis=1)  # blk3: o*tanh(c)
            return c_new, h_new

        def layer_update(l, t_row, states):
            """Advance layer l by one timestep, reading ONLY the old `states`."""
            c_l, h_l = states[l]
            if l == 0:
                gates = pre0_ref[pl.ds(t_row, BT), :]
            else:
                h_below = states[l - 1][1]   # h_{l-1} at this layer's timestep
                gates = (
                    jnp.dot(h_below, w_ih[l][...],
                            preferred_element_type=jnp.float32)
                    + bias[l][...]
                )
            gates = gates + jnp.dot(h_l, w_hh[l][...],
                                    preferred_element_type=jnp.float32)
            return cell(gates, c_l)

        # ---- Wavefront: at global step s, layer l processes timestep s - l.
        # All reads come from the previous step's carry, so the L per-layer
        # chains are independent within a step and interleave on the MXU/EUP.
        zeros = jnp.zeros((BT, G4), jnp.float32)
        states = [(zeros, zeros) for _ in range(L)]

        def static_step(s, states):
            new_states = list(states)
            for l in range(L):
                t = s - l
                if 0 <= t < T:
                    new_states[l] = layer_update(l, t * BT, states)
            return new_states

        def dynamic_step(s, states):
            states = list(states)
            row0 = pl.multiple_of(s * BT, BT)   # only layer 0 reads pre0_ref
            new_states = []
            for l in range(L):
                new_states.append(layer_update(l, row0 if l == 0 else 0, states))
            return tuple(new_states)

        # Prologue: ramp-up (not all layers active yet).
        for s in range(min(L - 1, T + L - 1)):
            states = static_step(s, states)
        # Steady state: every layer active.
        lo, hi = L - 1, T
        if hi > lo:
            trip = hi - lo
            states = list(lax.fori_loop(
                lo, hi, dynamic_step, tuple(states),
                unroll=True if trip <= 16 else 8))
        # Epilogue: ramp-down.
        for s in range(max(T, L - 1), T + L - 1):
            states = static_step(s, states)

        # ---- fc(out[:, -1, :]) : lane-dense (BT, out_pad) store ----
        h_last = states[L - 1][1]
        out_ref[...] = (
            jnp.dot(h_last, w_fc_ref[...], preferred_element_type=jnp.float32)
            + b_fc_ref[...]
        )

    return kernel


def stock_lstm_forward(x, params, num_layers, hidden_size):
    """Whole forward in a single pallas_call (small model, all weights in VMEM)."""
    B, T, D = x.shape
    H = hidden_size
    G4 = 4 * H
    out_dim = params["w_fc"].shape[1]
    b_pad = ((B + BT - 1) // BT) * BT
    n_bt = b_pad // BT
    out_pad = ((out_dim + 127) // 128) * 128

    # (B,T,D) -> batch-tile-major, time, sublane-rows: (n_bt*T*BT, D) so each
    # grid step sees a contiguous (T*BT, D) slab with per-timestep rows
    # sublane-aligned.
    x_p = jnp.pad(x, ((0, b_pad - B), (0, 0), (0, 0)))           # (b_pad, T, D)
    x_p = x_p.reshape(n_bt, BT, T, D).transpose(0, 2, 1, 3)       # (n_bt, T, BT, D)
    x_slab = x_p.reshape(n_bt * T * BT, D)

    def stack_rows(w):
        # (H, N) -> (4H, N): real rows where h lives (lane block 3), zeros
        # elsewhere so junk lane blocks contribute exactly 0.
        return jnp.pad(w, ((3 * H, 0), (0, 0)))

    args = [x_slab]
    for l in range(num_layers):
        w_ih = params[f"w_ih{l}"]            # (in, 4H)
        w_hh = params[f"w_hh{l}"]            # (H, 4H)
        b = params[f"b{l}"]                  # (1, 4H) = b_ih + b_hh
        args += [w_ih if l == 0 else stack_rows(w_ih), stack_rows(w_hh), b]
    w_fc = jnp.pad(params["w_fc"], ((0, 0), (0, out_pad - out_dim)))
    b_fc = jnp.pad(params["b_fc"], ((0, 0), (0, out_pad - out_dim)))
    args += [stack_rows(w_fc), b_fc]

    # Weights: whole-array blocks, same block every grid step.
    def whole(a):
        nd = a.ndim
        return pl.BlockSpec(a.shape, lambda i, _nd=nd: (0,) * _nd)

    in_specs = [pl.BlockSpec((T * BT, D), lambda i: (i, 0))]
    in_specs += [whole(a) for a in args[1:]]
    out_specs = pl.BlockSpec((BT, out_pad), lambda i: (i, 0))

    # Advisory cost estimate for XLA scheduling around the custom call.
    flops = 2 * n_bt * T * BT * D * G4                                # layer-0 slab
    flops += 2 * n_bt * T * BT * G4 * G4 * (2 * num_layers - 1)       # recurrent + inter-layer
    flops += 2 * n_bt * BT * G4 * out_pad                             # fc head
    transcendentals = 2 * num_layers * T * n_bt * BT * G4             # tanh(gates)+tanh(c)
    bytes_accessed = 4 * (sum(int(a.size) for a in args) + b_pad * out_pad)

    out = pl.pallas_call(
        _make_lstm_kernel(num_layers, T, H),
        out_shape=jax.ShapeDtypeStruct((b_pad, out_pad), jnp.float32),
        grid=(n_bt,),
        in_specs=in_specs,
        out_specs=out_specs,
        scratch_shapes=[
            pltpu.VMEM((T * BT, G4), jnp.float32),   # layer-0 gate-preactivation slab
        ],
        compiler_params=pltpu.CompilerParams(
            dimension_semantics=("parallel",),
            vmem_limit_bytes=32 * 1024 * 1024,
        ),
        cost_estimate=pl.CostEstimate(
            flops=int(flops),
            transcendentals=int(transcendentals),
            bytes_accessed=int(bytes_accessed),
        ),
    )(*args)
    return out[:B, :out_dim]


def init_params(key, input_size, hidden_size, num_layers, output_size):
    """Deterministic synthetic init mirroring PyTorch parameter shapes.

    PyTorch stores weight_ih_l{k}: (4H, in), weight_hh_l{k}: (4H, H),
    bias_ih/bias_hh: (4H,).  We pre-transpose weights to (in, 4H)/(H, 4H)
    and fold the two biases into one (1, 4H) row.  Gate order is (i, f, g, o).
    """
    H = hidden_size
    bound = 1.0 / jnp.sqrt(jnp.float32(H))
    params = {}
    for l in range(num_layers):
        in_sz = input_size if l == 0 else hidden_size
        key, k1, k2, k3, k4 = jax.random.split(key, 5)
        w_ih = jax.random.uniform(k1, (4 * H, in_sz), jnp.float32, -bound, bound)
        w_hh = jax.random.uniform(k2, (4 * H, H), jnp.float32, -bound, bound)
        b_ih = jax.random.uniform(k3, (4 * H,), jnp.float32, -bound, bound)
        b_hh = jax.random.uniform(k4, (4 * H,), jnp.float32, -bound, bound)
        params[f"w_ih{l}"] = w_ih.T              # (in, 4H)
        params[f"w_hh{l}"] = w_hh.T              # (H, 4H)
        params[f"b{l}"] = (b_ih + b_hh).reshape(1, 4 * H)
    key, k1, k2 = jax.random.split(key, 3)
    fc_bound = 1.0 / jnp.sqrt(jnp.float32(H))
    w_fc = jax.random.uniform(k1, (output_size, H), jnp.float32, -fc_bound, fc_bound)
    b_fc = jax.random.uniform(k2, (output_size,), jnp.float32, -fc_bound, fc_bound)
    params["w_fc"] = w_fc.T                      # (H, output_size)
    params["b_fc"] = b_fc.reshape(1, output_size)
    return params


def reference_forward(x, params, num_layers, hidden_size):
    """Pure-JAX reference matching nn.LSTM(batch_first=True) + nn.Linear."""
    B, T, _ = x.shape
    H = hidden_size
    seq = x
    for l in range(num_layers):
        w_ih = params[f"w_ih{l}"]
        w_hh = params[f"w_hh{l}"]
        b = params[f"b{l}"]
        h = jnp.zeros((B, H), jnp.float32)
        c = jnp.zeros((B, H), jnp.float32)
        outs = []
        for t in range(T):
            gates = seq[:, t, :] @ w_ih + h @ w_hh + b
            i_g = jax.nn.sigmoid(gates[:, 0 * H:1 * H])
            f_g = jax.nn.sigmoid(gates[:, 1 * H:2 * H])
            g_g = jnp.tanh(gates[:, 2 * H:3 * H])
            o_g = jax.nn.sigmoid(gates[:, 3 * H:4 * H])
            c = f_g * c + i_g * g_g
            h = o_g * jnp.tanh(c)
            outs.append(h)
        seq = jnp.stack(outs, axis=1)
    return seq[:, -1, :] @ params["w_fc"] + params["b_fc"]


if __name__ == "__main__":
    # Small shapes consistent with the module's forward:
    batch, seq_len = 2, 8
    input_size, hidden_size, num_layers, output_size = 4, 32, 2, 1

    key = jax.random.PRNGKey(0)
    key, kx = jax.random.split(key)
    x = jax.random.normal(kx, (batch, seq_len, input_size), jnp.float32)

    params = init_params(key, input_size, hidden_size, num_layers, output_size)

    out = stock_lstm_forward(x, params, num_layers, hidden_size)
    out = jax.block_until_ready(out)

    ref = reference_forward(x, params, num_layers, hidden_size)
    assert out.shape == (batch, output_size)
    assert jnp.allclose(out, ref, rtol=1e-4, atol=1e-4), (out, ref)

    print("KERNEL_OK")
</pallas_src>

<mosaic_0001>
module attributes {stable_mosaic.version = 11 : i64} {
  func.func @kernel(%arg0: i32, %arg1: memref<64x4xf32, #tpu.memory_space<vmem>>, %arg2: memref<4x128xf32, #tpu.memory_space<vmem>>, %arg3: memref<128x128xf32, #tpu.memory_space<vmem>>, %arg4: memref<1x128xf32, #tpu.memory_space<vmem>>, %arg5: memref<128x128xf32, #tpu.memory_space<vmem>>, %arg6: memref<128x128xf32, #tpu.memory_space<vmem>>, %arg7: memref<1x128xf32, #tpu.memory_space<vmem>>, %arg8: memref<128x128xf32, #tpu.memory_space<vmem>>, %arg9: memref<1x128xf32, #tpu.memory_space<vmem>>, %arg10: memref<8x128xf32, #tpu.memory_space<vmem>>, %arg11: memref<64x128xf32, #tpu.memory_space<vmem>>) attributes {dimension_semantics = [#tpu.dimension_semantics<parallel>], iteration_bounds = array<i64: 1>, scalar_prefetch = 0 : i64, scratch_operands = 1 : i64, tpu.core_type = #tpu.core_type<tc>, window_params = [{transform_indices = @transform_0, window_bounds = array<i64: 64, 4>}, {pipeline_mode = #tpu.pipeline_mode<synchronous>, transform_indices = @transform_1, window_bounds = array<i64: 4, 128>}, {pipeline_mode = #tpu.pipeline_mode<synchronous>, transform_indices = @transform_2, window_bounds = array<i64: 128, 128>}, {pipeline_mode = #tpu.pipeline_mode<synchronous>, transform_indices = @transform_3, window_bounds = array<i64: 1, 128>}, {pipeline_mode = #tpu.pipeline_mode<synchronous>, transform_indices = @transform_4, window_bounds = array<i64: 128, 128>}, {pipeline_mode = #tpu.pipeline_mode<synchronous>, transform_indices = @transform_5, window_bounds = array<i64: 128, 128>}, {pipeline_mode = #tpu.pipeline_mode<synchronous>, transform_indices = @transform_6, window_bounds = array<i64: 1, 128>}, {pipeline_mode = #tpu.pipeline_mode<synchronous>, transform_indices = @transform_7, window_bounds = array<i64: 128, 128>}, {pipeline_mode = #tpu.pipeline_mode<synchronous>, transform_indices = @transform_8, window_bounds = array<i64: 1, 128>}, {transform_indices = @transform_9, window_bounds = array<i64: 8, 128>}]} {
    %0 = tpu.iota {dimensions = array<i32: 1>} : vector<8x128xi32>
    %c64_i32 = arith.constant 64 : i32
    %1 = vector.broadcast %c64_i32 : i32 to vector<8x128xi32>
    %2 = arith.cmpi sge, %0, %1 : vector<8x128xi32>
    %c96_i32 = arith.constant 96 : i32
    %3 = vector.broadcast %c96_i32 : i32 to vector<8x128xi32>
    %4 = arith.cmpi slt, %0, %3 : vector<8x128xi32>
    %5 = arith.andi %2, %4 : vector<8x128xi1>
    %cst = arith.constant 1.000000e+00 : f32
    %cst_0 = arith.constant 5.000000e-01 : f32
    %6 = vector.broadcast %cst : f32 to vector<8x128xf32>
    %7 = vector.broadcast %cst_0 : f32 to vector<8x128xf32>
    %8 = arith.select %5, %6, %7 : vector<8x128xi1>, vector<8x128xf32>
    %c0 = arith.constant 0 : index
    %c0_1 = arith.constant 0 : index
    %9 = vector.load %arg1[%c0, %c0_1] : memref<64x4xf32, #tpu.memory_space<vmem>>, vector<64x4xf32>
    %c0_2 = arith.constant 0 : index
    %c0_3 = arith.constant 0 : index
    %10 = vector.load %arg2[%c0_2, %c0_3] : memref<4x128xf32, #tpu.memory_space<vmem>>, vector<4x128xf32>
    %cst_4 = arith.constant dense<0.000000e+00> : vector<64x128xf32>
    %11 = tpu.matmul %9, %10, %cst_4 {dimension_numbers = #tpu.dot_dimension_numbers<[1], [0], [0], [1], [0, 0, 1, 1], [], []>} : vector<64x4xf32>, vector<4x128xf32>, vector<64x128xf32> -> vector<64x128xf32>
    %c0_5 = arith.constant 0 : index
    %c0_6 = arith.constant 0 : index
    %12 = vector.load %arg4[%c0_5, %c0_6] : memref<1x128xf32, #tpu.memory_space<vmem>>, vector<1x128xf32>
    %13 = vector.broadcast %12 : vector<1x128xf32> to vector<64x128xf32>
    %14 = arith.addf %11, %13 : vector<64x128xf32>
    %c0_7 = arith.constant 0 : index
    %c0_8 = arith.constant 0 : index
    %15 = vector.load %arg11[%c0_7, %c0_8] : memref<64x128xf32, #tpu.memory_space<vmem>>, vector<64x128xf32>
    tpu.vector_store %arg11[%c0_7, %c0_8], %14 {strides = array<i32>} : memref<64x128xf32, #tpu.memory_space<vmem>>, vector<64x128xf32>,
    %cst_9 = arith.constant 0.000000e+00 : f32
    %16 = vector.broadcast %cst_9 : f32 to vector<8x128xf32>
    %c0_10 = arith.constant 0 : index
    %c0_11 = arith.constant 0 : index
    %17 = vector.load %arg11[%c0_10, %c0_11] : memref<64x128xf32, #tpu.memory_space<vmem>>, vector<8x128xf32>
    %c0_12 = arith.constant 0 : index
    %c0_13 = arith.constant 0 : index
    %18 = vector.load %arg3[%c0_12, %c0_13] : memref<128x128xf32, #tpu.memory_space<vmem>>, vector<128x128xf32>
    %cst_14 = arith.constant dense<0.000000e+00> : vector<8x128xf32>
    %19 = tpu.matmul %16, %18, %cst_14 {dimension_numbers = #tpu.dot_dimension_numbers<[1], [0], [0], [1], [0, 0, 1, 1], [], []>} : vector<8x128xf32>, vector<128x128xf32>, vector<8x128xf32> -> vector<8x128xf32>
    %20 = arith.addf %17, %19 : vector<8x128xf32>
    %21 = arith.mulf %20, %8 : vector<8x128xf32>
    %22 = math.tanh %21 : vector<8x128xf32>
    %cst_15 = arith.constant 1.000000e+00 : f32
    %23 = vector.broadcast %cst_15 : f32 to vector<8x128xf32>
    %24 = arith.addf %22, %23 : vector<8x128xf32>
    %cst_16 = arith.constant 5.000000e-01 : f32
    %25 = vector.broadcast %cst_16 : f32 to vector<8x128xf32>
    %26 = arith.mulf %25, %24 : vector<8x128xf32>
    %27 = arith.select %5, %22, %26 : vector<8x128xi1>, vector<8x128xf32>
    %28 = vector.extract_strided_slice %27 {offsets = [0, 64], sizes = [8, 64], strides = [1, 1]} : vector<8x128xf32> to vector<8x64xf32>
    %29 = vector.extract_strided_slice %27 {offsets = [0, 0], sizes = [8, 64], strides = [1, 1]} : vector<8x128xf32> to vector<8x64xf32>
    %30 = tpu.concatenate %28, %29 in 1 : vector<8x64xf32>, vector<8x64xf32> -> vector<8x128xf32>
    %31 = arith.mulf %27, %30 : vector<8x128xf32>
    %32 = arith.mulf %27, %16 : vector<8x128xf32>
    %33 = vector.extract_strided_slice %31 {offsets = [0, 96], sizes = [8, 32], strides = [1, 1]} : vector<8x128xf32> to vector<8x32xf32>
    %34 = vector.extract_strided_slice %31 {offsets = [0, 0], sizes = [8, 96], strides = [1, 1]} : vector<8x128xf32> to vector<8x96xf32>
    %35 = tpu.concatenate %33, %34 in 1 : vector<8x32xf32>, vector<8x96xf32> -> vector<8x128xf32>
    %36 = arith.addf %32, %35 : vector<8x128xf32>
    %37 = math.tanh %36 : vector<8x128xf32>
    %38 = vector.extract_strided_slice %37 {offsets = [0, 64], sizes = [8, 64], strides = [1, 1]} : vector<8x128xf32> to vector<8x64xf32>
    %39 = vector.extract_strided_slice %37 {offsets = [0, 0], sizes = [8, 64], strides = [1, 1]} : vector<8x128xf32> to vector<8x64xf32>
    %40 = tpu.concatenate %38, %39 in 1 : vector<8x64xf32>, vector<8x64xf32> -> vector<8x128xf32>
    %41 = arith.mulf %27, %40 : vector<8x128xf32>
    %c1_i32 = arith.constant 1 : i32
    %c8_i32 = arith.constant 8 : i32
    %42 = arith.muli %c1_i32, %c8_i32 : i32
    %43 = tpu.assume_multiple %42, 8 : i32
    %44 = arith.index_cast %43 : i32 to index
    %c0_17 = arith.constant 0 : index
    %45 = vector.load %arg11[%44, %c0_17] : memref<64x128xf32, #tpu.memory_space<vmem>>, vector<8x128xf32>
    %c0_18 = arith.constant 0 : index
    %c0_19 = arith.constant 0 : index
    %46 = vector.load %arg3[%c0_18, %c0_19] : memref<128x128xf32, #tpu.memory_space<vmem>>, vector<128x128xf32>
    %cst_20 = arith.constant dense<0.000000e+00> : vector<8x128xf32>
    %47 = tpu.matmul %41, %46, %cst_20 {dimension_numbers = #tpu.dot_dimension_numbers<[1], [0], [0], [1], [0, 0, 1, 1], [], []>} : vector<8x128xf32>, vector<128x128xf32>, vector<8x128xf32> -> vector<8x128xf32>
    %48 = arith.addf %45, %47 : vector<8x128xf32>
    %49 = arith.mulf %48, %8 : vector<8x128xf32>
    %50 = math.tanh %49 : vector<8x128xf32>
    %cst_21 = arith.constant 1.000000e+00 : f32
    %51 = vector.broadcast %cst_21 : f32 to vector<8x128xf32>
    %52 = arith.addf %50, %51 : vector<8x128xf32>
    %cst_22 = arith.constant 5.000000e-01 : f32
    %53 = vector.broadcast %cst_22 : f32 to vector<8x128xf32>
    %54 = arith.mulf %53, %52 : vector<8x128xf32>
    %55 = arith.select %5, %50, %54 : vector<8x128xi1>, vector<8x128xf32>
    %56 = vector.extract_strided_slice %55 {offsets = [0, 64], sizes = [8, 64], strides = [1, 1]} : vector<8x128xf32> to vector<8x64xf32>
    %57 = vector.extract_strided_slice %55 {offsets = [0, 0], sizes = [8, 64], strides = [1, 1]} : vector<8x128xf32> to vector<8x64xf32>
    %58 = tpu.concatenate %56, %57 in 1 : vector<8x64xf32>, vector<8x64xf32> -> vector<8x128xf32>
    %59 = arith.mulf %55, %58 : vector<8x128xf32>
    %60 = arith.mulf %55, %36 : vector<8x128xf32>
    %61 = vector.extract_strided_slice %59 {offsets = [0, 96], sizes = [8, 32], strides = [1, 1]} : vector<8x128xf32> to vector<8x32xf32>
    %62 = vector.extract_strided_slice %59 {offsets = [0, 0], sizes = [8, 96], strides = [1, 1]} : vector<8x128xf32> to vector<8x96xf32>
    %63 = tpu.concatenate %61, %62 in 1 : vector<8x32xf32>, vector<8x96xf32> -> vector<8x128xf32>
    %64 = arith.addf %60, %63 : vector<8x128xf32>
    %65 = math.tanh %64 : vector<8x128xf32>
    %66 = vector.extract_strided_slice %65 {offsets = [0, 64], sizes = [8, 64], strides = [1, 1]} : vector<8x128xf32> to vector<8x64xf32>
    %67 = vector.extract_strided_slice %65 {offsets = [0, 0], sizes = [8, 64], strides = [1, 1]} : vector<8x128xf32> to vector<8x64xf32>
    %68 = tpu.concatenate %66, %67 in 1 : vector<8x64xf32>, vector<8x64xf32> -> vector<8x128xf32>
    %69 = arith.mulf %55, %68 : vector<8x128xf32>
    %c0_23 = arith.constant 0 : index
    %c0_24 = arith.constant 0 : index
    %70 = vector.load %arg5[%c0_23, %c0_24] : memref<128x128xf32, #tpu.memory_space<vmem>>, vector<128x128xf32>
    %cst_25 = arith.constant dense<0.000000e+00> : vector<8x128xf32>
    %71 = tpu.matmul %41, %70, %cst_25 {dimension_numbers = #tpu.dot_dimension_numbers<[1], [0], [0], [1], [0, 0, 1, 1], [], []>} : vector<8x128xf32>, vector<128x128xf32>, vector<8x128xf32> -> vector<8x128xf32>
    %c0_26 = arith.constant 0 : index
    %c0_27 = arith.constant 0 : index
    %72 = vector.load %arg7[%c0_26, %c0_27] : memref<1x128xf32, #tpu.memory_space<vmem>>, vector<1x128xf32>
    %73 = vector.broadcast %72 : vector<1x128xf32> to vector<8x128xf32>
    %74 = arith.addf %71, %73 : vector<8x128xf32>
    %c0_28 = arith.constant 0 : index
    %c0_29 = arith.constant 0 : index
    %75 = vector.load %arg6[%c0_28, %c0_29] : memref<128x128xf32, #tpu.memory_space<vmem>>, vector<128x128xf32>
    %cst_30 = arith.constant dense<0.000000e+00> : vector<8x128xf32>
    %76 = tpu.matmul %16, %75, %cst_30 {dimension_numbers = #tpu.dot_dimension_numbers<[1], [0], [0], [1], [0, 0, 1, 1], [], []>} : vector<8x128xf32>, vector<128x128xf32>, vector<8x128xf32> -> vector<8x128xf32>
    %77 = arith.addf %74, %76 : vector<8x128xf32>
    %78 = arith.mulf %77, %8 : vector<8x128xf32>
    %79 = math.tanh %78 : vector<8x128xf32>
    %cst_31 = arith.constant 1.000000e+00 : f32
    %80 = vector.broadcast %cst_31 : f32 to vector<8x128xf32>
    %81 = arith.addf %79, %80 : vector<8x128xf32>
    %cst_32 = arith.constant 5.000000e-01 : f32
    %82 = vector.broadcast %cst_32 : f32 to vector<8x128xf32>
    %83 = arith.mulf %82, %81 : vector<8x128xf32>
    %84 = arith.select %5, %79, %83 : vector<8x128xi1>, vector<8x128xf32>
    %85 = vector.extract_strided_slice %84 {offsets = [0, 64], sizes = [8, 64], strides = [1, 1]} : vector<8x128xf32> to vector<8x64xf32>
    %86 = vector.extract_strided_slice %84 {offsets = [0, 0], sizes = [8, 64], strides = [1, 1]} : vector<8x128xf32> to vector<8x64xf32>
    %87 = tpu.concatenate %85, %86 in 1 : vector<8x64xf32>, vector<8x64xf32> -> vector<8x128xf32>
    %88 = arith.mulf %84, %87 : vector<8x128xf32>
    %89 = arith.mulf %84, %16 : vector<8x128xf32>
    %90 = vector.extract_strided_slice %88 {offsets = [0, 96], sizes = [8, 32], strides = [1, 1]} : vector<8x128xf32> to vector<8x32xf32>
    %91 = vector.extract_strided_slice %88 {offsets = [0, 0], sizes = [8, 96], strides = [1, 1]} : vector<8x128xf32> to vector<8x96xf32>
    %92 = tpu.concatenate %90, %91 in 1 : vector<8x32xf32>, vector<8x96xf32> -> vector<8x128xf32>
    %93 = arith.addf %89, %92 : vector<8x128xf32>
    %94 = math.tanh %93 : vector<8x128xf32>
    %95 = vector.extract_strided_slice %94 {offsets = [0, 64], sizes = [8, 64], strides = [1, 1]} : vector<8x128xf32> to vector<8x64xf32>
    %96 = vector.extract_strided_slice %94 {offsets = [0, 0], sizes = [8, 64], strides = [1, 1]} : vector<8x128xf32> to vector<8x64xf32>
    %97 = tpu.concatenate %95, %96 in 1 : vector<8x64xf32>, vector<8x64xf32> -> vector<8x128xf32>
    %98 = arith.mulf %84, %97 : vector<8x128xf32>
    %c2_i32 = arith.constant 2 : i32
    %c8_i32_33 = arith.constant 8 : i32
    %99 = arith.muli %c2_i32, %c8_i32_33 : i32
    %100 = tpu.assume_multiple %99, 8 : i32
    %101 = arith.index_cast %100 : i32 to index
    %c0_34 = arith.constant 0 : index
    %102 = vector.load %arg11[%101, %c0_34] : memref<64x128xf32, #tpu.memory_space<vmem>>, vector<8x128xf32>
    %c0_35 = arith.constant 0 : index
    %c0_36 = arith.constant 0 : index
    %103 = vector.load %arg3[%c0_35, %c0_36] : memref<128x128xf32, #tpu.memory_space<vmem>>, vector<128x128xf32>
    %cst_37 = arith.constant dense<0.000000e+00> : vector<8x128xf32>
    %104 = tpu.matmul %69, %103, %cst_37 {dimension_numbers = #tpu.dot_dimension_numbers<[1], [0], [0], [1], [0, 0, 1, 1], [], []>} : vector<8x128xf32>, vector<128x128xf32>, vector<8x128xf32> -> vector<8x128xf32>
    %105 = arith.addf %102, %104 : vector<8x128xf32>
    %106 = arith.mulf %105, %8 : vector<8x128xf32>
    %107 = math.tanh %106 : vector<8x128xf32>
    %cst_38 = arith.constant 1.000000e+00 : f32
    %108 = vector.broadcast %cst_38 : f32 to vector<8x128xf32>
    %109 = arith.addf %107, %108 : vector<8x128xf32>
    %cst_39 = arith.constant 5.000000e-01 : f32
    %110 = vector.broadcast %cst_39 : f32 to vector<8x128xf32>
    %111 = arith.mulf %110, %109 : vector<8x128xf32>
    %112 = arith.select %5, %107, %111 : vector<8x128xi1>, vector<8x128xf32>
    %113 = vector.extract_strided_slice %112 {offsets = [0, 64], sizes = [8, 64], strides = [1, 1]} : vector<8x128xf32> to vector<8x64xf32>
    %114 = vector.extract_strided_slice %112 {offsets = [0, 0], sizes = [8, 64], strides = [1, 1]} : vector<8x128xf32> to vector<8x64xf32>
    %115 = tpu.concatenate %113, %114 in 1 : vector<8x64xf32>, vector<8x64xf32> -> vector<8x128xf32>
    %116 = arith.mulf %112, %115 : vector<8x128xf32>
    %117 = arith.mulf %112, %64 : vector<8x128xf32>
    %118 = vector.extract_strided_slice %116 {offsets = [0, 96], sizes = [8, 32], strides = [1, 1]} : vector<8x128xf32> to vector<8x32xf32>
    %119 = vector.extract_strided_slice %116 {offsets = [0, 0], sizes = [8, 96], strides = [1, 1]} : vector<8x128xf32> to vector<8x96xf32>
    %120 = tpu.concatenate %118, %119 in 1 : vector<8x32xf32>, vector<8x96xf32> -> vector<8x128xf32>
    %121 = arith.addf %117, %120 : vector<8x128xf32>
    %122 = math.tanh %121 : vector<8x128xf32>
    %123 = vector.extract_strided_slice %122 {offsets = [0, 64], sizes = [8, 64], strides = [1, 1]} : vector<8x128xf32> to vector<8x64xf32>
    %124 = vector.extract_strided_slice %122 {offsets = [0, 0], sizes = [8, 64], strides = [1, 1]} : vector<8x128xf32> to vector<8x64xf32>
    %125 = tpu.concatenate %123, %124 in 1 : vector<8x64xf32>, vector<8x64xf32> -> vector<8x128xf32>
    %126 = arith.mulf %112, %125 : vector<8x128xf32>
    %c0_40 = arith.constant 0 : index
    %c0_41 = arith.constant 0 : index
    %127 = vector.load %arg5[%c0_40, %c0_41] : memref<128x128xf32, #tpu.memory_space<vmem>>, vector<128x128xf32>
    %cst_42 = arith.constant dense<0.000000e+00> : vector<8x128xf32>
    %128 = tpu.matmul %69, %127, %cst_42 {dimension_numbers = #tpu.dot_dimension_numbers<[1], [0], [0], [1], [0, 0, 1, 1], [], []>} : vector<8x128xf32>, vector<128x128xf32>, vector<8x128xf32> -> vector<8x128xf32>
    %c0_43 = arith.constant 0 : index
    %c0_44 = arith.constant 0 : index
    %129 = vector.load %arg7[%c0_43, %c0_44] : memref<1x128xf32, #tpu.memory_space<vmem>>, vector<1x128xf32>
    %130 = vector.broadcast %129 : vector<1x128xf32> to vector<8x128xf32>
    %131 = arith.addf %128, %130 : vector<8x128xf32>
    %c0_45 = arith.constant 0 : index
    %c0_46 = arith.constant 0 : index
    %132 = vector.load %arg6[%c0_45, %c0_46] : memref<128x128xf32, #tpu.memory_space<vmem>>, vector<128x128xf32>
    %cst_47 = arith.constant dense<0.000000e+00> : vector<8x128xf32>
    %133 = tpu.matmul %98, %132, %cst_47 {dimension_numbers = #tpu.dot_dimension_numbers<[1], [0], [0], [1], [0, 0, 1, 1], [], []>} : vector<8x128xf32>, vector<128x128xf32>, vector<8x128xf32> -> vector<8x128xf32>
    %134 = arith.addf %131, %133 : vector<8x128xf32>
    %135 = arith.mulf %134, %8 : vector<8x128xf32>
    %136 = math.tanh %135 : vector<8x128xf32>
    %cst_48 = arith.constant 1.000000e+00 : f32
    %137 = vector.broadcast %cst_48 : f32 to vector<8x128xf32>
    %138 = arith.addf %136, %137 : vector<8x128xf32>
    %cst_49 = arith.constant 5.000000e-01 : f32
    %139 = vector.broadcast %cst_49 : f32 to vector<8x128xf32>
    %140 = arith.mulf %139, %138 : vector<8x128xf32>
    %141 = arith.select %5, %136, %140 : vector<8x128xi1>, vector<8x128xf32>
    %142 = vector.extract_strided_slice %141 {offsets = [0, 64], sizes = [8, 64], strides = [1, 1]} : vector<8x128xf32> to vector<8x64xf32>
    %143 = vector.extract_strided_slice %141 {offsets = [0, 0], sizes = [8, 64], strides = [1, 1]} : vector<8x128xf32> to vector<8x64xf32>
    %144 = tpu.concatenate %142, %143 in 1 : vector<8x64xf32>, vector<8x64xf32> -> vector<8x128xf32>
    %145 = arith.mulf %141, %144 : vector<8x128xf32>
    %146 = arith.mulf %141, %93 : vector<8x128xf32>
    %147 = vector.extract_strided_slice %145 {offsets = [0, 96], sizes = [8, 32], strides = [1, 1]} : vector<8x128xf32> to vector<8x32xf32>
    %148 = vector.extract_strided_slice %145 {offsets = [0, 0], sizes = [8, 96], strides = [1, 1]} : vector<8x128xf32> to vector<8x96xf32>
    %149 = tpu.concatenate %147, %148 in 1 : vector<8x32xf32>, vector<8x96xf32> -> vector<8x128xf32>
    %150 = arith.addf %146, %149 : vector<8x128xf32>
    %151 = math.tanh %150 : vector<8x128xf32>
    %152 = vector.extract_strided_slice %151 {offsets = [0, 64], sizes = [8, 64], strides = [1, 1]} : vector<8x128xf32> to vector<8x64xf32>
    %153 = vector.extract_strided_slice %151 {offsets = [0, 0], sizes = [8, 64], strides = [1, 1]} : vector<8x128xf32> to vector<8x64xf32>
    %154 = tpu.concatenate %152, %153 in 1 : vector<8x64xf32>, vector<8x64xf32> -> vector<8x128xf32>
    %155 = arith.mulf %141, %154 : vector<8x128xf32>
    %c3_i32 = arith.constant 3 : i32
    %c8_i32_50 = arith.constant 8 : i32
    %156 = arith.muli %c3_i32, %c8_i32_50 : i32
    %157 = tpu.assume_multiple %156, 8 : i32
    %158 = arith.index_cast %157 : i32 to index
    %c0_51 = arith.constant 0 : index
    %159 = vector.load %arg11[%158, %c0_51] : memref<64x128xf32, #tpu.memory_space<vmem>>, vector<8x128xf32>
    %c0_52 = arith.constant 0 : index
    %c0_53 = arith.constant 0 : index
    %160 = vector.load %arg3[%c0_52, %c0_53] : memref<128x128xf32, #tpu.memory_space<vmem>>, vector<128x128xf32>
    %cst_54 = arith.constant dense<0.000000e+00> : vector<8x128xf32>
    %161 = tpu.matmul %126, %160, %cst_54 {dimension_numbers = #tpu.dot_dimension_numbers<[1], [0], [0], [1], [0, 0, 1, 1], [], []>} : vector<8x128xf32>, vector<128x128xf32>, vector<8x128xf32> -> vector<8x128xf32>
    %162 = arith.addf %159, %161 : vector<8x128xf32>
    %163 = arith.mulf %162, %8 : vector<8x128xf32>
    %164 = math.tanh %163 : vector<8x128xf32>
    %cst_55 = arith.constant 1.000000e+00 : f32
    %165 = vector.broadcast %cst_55 : f32 to vector<8x128xf32>
    %166 = arith.addf %164, %165 : vector<8x128xf32>
    %cst_56 = arith.constant 5.000000e-01 : f32
    %167 = vector.broadcast %cst_56 : f32 to vector<8x128xf32>
    %168 = arith.mulf %167, %166 : vector<8x128xf32>
    %169 = arith.select %5, %164, %168 : vector<8x128xi1>, vector<8x128xf32>
    %170 = vector.extract_strided_slice %169 {offsets = [0, 64], sizes = [8, 64], strides = [1, 1]} : vector<8x128xf32> to vector<8x64xf32>
    %171 = vector.extract_strided_slice %169 {offsets = [0, 0], sizes = [8, 64], strides = [1, 1]} : vector<8x128xf32> to vector<8x64xf32>
    %172 = tpu.concatenate %170, %171 in 1 : vector<8x64xf32>, vector<8x64xf32> -> vector<8x128xf32>
    %173 = arith.mulf %169, %172 : vector<8x128xf32>
    %174 = arith.mulf %169, %121 : vector<8x128xf32>
    %175 = vector.extract_strided_slice %173 {offsets = [0, 96], sizes = [8, 32], strides = [1, 1]} : vector<8x128xf32> to vector<8x32xf32>
    %176 = vector.extract_strided_slice %173 {offsets = [0, 0], sizes = [8, 96], strides = [1, 1]} : vector<8x128xf32> to vector<8x96xf32>
    %177 = tpu.concatenate %175, %176 in 1 : vector<8x32xf32>, vector<8x96xf32> -> vector<8x128xf32>
    %178 = arith.addf %174, %177 : vector<8x128xf32>
    %179 = math.tanh %178 : vector<8x128xf32>
    %180 = vector.extract_strided_slice %179 {offsets = [0, 64], sizes = [8, 64], strides = [1, 1]} : vector<8x128xf32> to vector<8x64xf32>
    %181 = vector.extract_strided_slice %179 {offsets = [0, 0], sizes = [8, 64], strides = [1, 1]} : vector<8x128xf32> to vector<8x64xf32>
    %182 = tpu.concatenate %180, %181 in 1 : vector<8x64xf32>, vector<8x64xf32> -> vector<8x128xf32>
    %183 = arith.mulf %169, %182 : vector<8x128xf32>
    %c0_57 = arith.constant 0 : index
    %c0_58 = arith.constant 0 : index
    %184 = vector.load %arg5[%c0_57, %c0_58] : memref<128x128xf32, #tpu.memory_space<vmem>>, vector<128x128xf32>
    %cst_59 = arith.constant dense<0.000000e+00> : vector<8x128xf32>
    %185 = tpu.matmul %126, %184, %cst_59 {dimension_numbers = #tpu.dot_dimension_numbers<[1], [0], [0], [1], [0, 0, 1, 1], [], []>} : vector<8x128xf32>, vector<128x128xf32>, vector<8x128xf32> -> vector<8x128xf32>
    %c0_60 = arith.constant 0 : index
    %c0_61 = arith.constant 0 : index
    %186 = vector.load %arg7[%c0_60, %c0_61] : memref<1x128xf32, #tpu.memory_space<vmem>>, vector<1x128xf32>
    %187 = vector.broadcast %186 : vector<1x128xf32> to vector<8x128xf32>
    %188 = arith.addf %185, %187 : vector<8x128xf32>
    %c0_62 = arith.constant 0 : index
    %c0_63 = arith.constant 0 : index
    %189 = vector.load %arg6[%c0_62, %c0_63] : memref<128x128xf32, #tpu.memory_space<vmem>>, vector<128x128xf32>
    %cst_64 = arith.constant dense<0.000000e+00> : vector<8x128xf32>
    %190 = tpu.matmul %155, %189, %cst_64 {dimension_numbers = #tpu.dot_dimension_numbers<[1], [0], [0], [1], [0, 0, 1, 1], [], []>} : vector<8x128xf32>, vector<128x128xf32>, vector<8x128xf32> -> vector<8x128xf32>
    %191 = arith.addf %188, %190 : vector<8x128xf32>
    %192 = arith.mulf %191, %8 : vector<8x128xf32>
    %193 = math.tanh %192 : vector<8x128xf32>
    %cst_65 = arith.constant 1.000000e+00 : f32
    %194 = vector.broadcast %cst_65 : f32 to vector<8x128xf32>
    %195 = arith.addf %193, %194 : vector<8x128xf32>
    %cst_66 = arith.constant 5.000000e-01 : f32
    %196 = vector.broadcast %cst_66 : f32 to vector<8x128xf32>
    %197 = arith.mulf %196, %195 : vector<8x128xf32>
    %198 = arith.select %5, %193, %197 : vector<8x128xi1>, vector<8x128xf32>
    %199 = vector.extract_strided_slice %198 {offsets = [0, 64], sizes = [8, 64], strides = [1, 1]} : vector<8x128xf32> to vector<8x64xf32>
    %200 = vector.extract_strided_slice %198 {offsets = [0, 0], sizes = [8, 64], strides = [1, 1]} : vector<8x128xf32> to vector<8x64xf32>
    %201 = tpu.concatenate %199, %200 in 1 : vector<8x64xf32>, vector<8x64xf32> -> vector<8x128xf32>
    %202 = arith.mulf %198, %201 : vector<8x128xf32>
    %203 = arith.mulf %198, %150 : vector<8x128xf32>
    %204 = vector.extract_strided_slice %202 {offsets = [0, 96], sizes = [8, 32], strides = [1, 1]} : vector<8x128xf32> to vector<8x32xf32>
    %205 = vector.extract_strided_slice %202 {offsets = [0, 0], sizes = [8, 96], strides = [1, 1]} : vector<8x128xf32> to vector<8x96xf32>
    %206 = tpu.concatenate %204, %205 in 1 : vector<8x32xf32>, vector<8x96xf32> -> vector<8x128xf32>
    %207 = arith.addf %203, %206 : vector<8x128xf32>
    %208 = math.tanh %207 : vector<8x128xf32>
    %209 = vector.extract_strided_slice %208 {offsets = [0, 64], sizes = [8, 64], strides = [1, 1]} : vector<8x128xf32> to vector<8x64xf32>
    %210 = vector.extract_strided_slice %208 {offsets = [0, 0], sizes = [8, 64], strides = [1, 1]} : vector<8x128xf32> to vector<8x64xf32>
    %211 = tpu.concatenate %209, %210 in 1 : vector<8x64xf32>, vector<8x64xf32> -> vector<8x128xf32>
    %212 = arith.mulf %198, %211 : vector<8x128xf32>
    %c4_i32 = arith.constant 4 : i32
    %c8_i32_67 = arith.constant 8 : i32
    %213 = arith.muli %c4_i32, %c8_i32_67 : i32
    %214 = tpu.assume_multiple %213, 8 : i32
    %215 = arith.index_cast %214 : i32 to index
    %c0_68 = arith.constant 0 : index
    %216 = vector.load %arg11[%215, %c0_68] : memref<64x128xf32, #tpu.memory_space<vmem>>, vector<8x128xf32>
    %c0_69 = arith.constant 0 : index
    %c0_70 = arith.constant 0 : index
    %217 = vector.load %arg3[%c0_69, %c0_70] : memref<128x128xf32, #tpu.memory_space<vmem>>, vector<128x128xf32>
    %cst_71 = arith.constant dense<0.000000e+00> : vector<8x128xf32>
    %218 = tpu.matmul %183, %217, %cst_71 {dimension_numbers = #tpu.dot_dimension_numbers<[1], [0], [0], [1], [0, 0, 1, 1], [], []>} : vector<8x128xf32>, vector<128x128xf32>, vector<8x128xf32> -> vector<8x128xf32>
    %219 = arith.addf %216, %218 : vector<8x128xf32>
    %220 = arith.mulf %219, %8 : vector<8x128xf32>
    %221 = math.tanh %220 : vector<8x128xf32>
    %cst_72 = arith.constant 1.000000e+00 : f32
    %222 = vector.broadcast %cst_72 : f32 to vector<8x128xf32>
    %223 = arith.addf %221, %222 : vector<8x128xf32>
    %cst_73 = arith.constant 5.000000e-01 : f32
    %224 = vector.broadcast %cst_73 : f32 to vector<8x128xf32>
    %225 = arith.mulf %224, %223 : vector<8x128xf32>
    %226 = arith.select %5, %221, %225 : vector<8x128xi1>, vector<8x128xf32>
    %227 = vector.extract_strided_slice %226 {offsets = [0, 64], sizes = [8, 64], strides = [1, 1]} : vector<8x128xf32> to vector<8x64xf32>
    %228 = vector.extract_strided_slice %226 {offsets = [0, 0], sizes = [8, 64], strides = [1, 1]} : vector<8x128xf32> to vector<8x64xf32>
    %229 = tpu.concatenate %227, %228 in 1 : vector<8x64xf32>, vector<8x64xf32> -> vector<8x128xf32>
    %230 = arith.mulf %226, %229 : vector<8x128xf32>
    %231 = arith.mulf %226, %178 : vector<8x128xf32>
    %232 = vector.extract_strided_slice %230 {offsets = [0, 96], sizes = [8, 32], strides = [1, 1]} : vector<8x128xf32> to vector<8x32xf32>
    %233 = vector.extract_strided_slice %230 {offsets = [0, 0], sizes = [8, 96], strides = [1, 1]} : vector<8x128xf32> to vector<8x96xf32>
    %234 = tpu.concatenate %232, %233 in 1 : vector<8x32xf32>, vector<8x96xf32> -> vector<8x128xf32>
    %235 = arith.addf %231, %234 : vector<8x128xf32>
    %236 = math.tanh %235 : vector<8x128xf32>
    %237 = vector.extract_strided_slice %236 {offsets = [0, 64], sizes = [8, 64], strides = [1, 1]} : vector<8x128xf32> to vector<8x64xf32>
    %238 = vector.extract_strided_slice %236 {offsets = [0, 0], sizes = [8, 64], strides = [1, 1]} : vector<8x128xf32> to vector<8x64xf32>
    %239 = tpu.concatenate %237, %238 in 1 : vector<8x64xf32>, vector<8x64xf32> -> vector<8x128xf32>
    %240 = arith.mulf %226, %239 : vector<8x128xf32>
    %c0_74 = arith.constant 0 : index
    %c0_75 = arith.constant 0 : index
    %241 = vector.load %arg5[%c0_74, %c0_75] : memref<128x128xf32, #tpu.memory_space<vmem>>, vector<128x128xf32>
    %cst_76 = arith.constant dense<0.000000e+00> : vector<8x128xf32>
    %242 = tpu.matmul %183, %241, %cst_76 {dimension_numbers = #tpu.dot_dimension_numbers<[1], [0], [0], [1], [0, 0, 1, 1], [], []>} : vector<8x128xf32>, vector<128x128xf32>, vector<8x128xf32> -> vector<8x128xf32>
    %c0_77 = arith.constant 0 : index
    %c0_78 = arith.constant 0 : index
    %243 = vector.load %arg7[%c0_77, %c0_78] : memref<1x128xf32, #tpu.memory_space<vmem>>, vector<1x128xf32>
    %244 = vector.broadcast %243 : vector<1x128xf32> to vector<8x128xf32>
    %245 = arith.addf %242, %244 : vector<8x128xf32>
    %c0_79 = arith.constant 0 : index
    %c0_80 = arith.constant 0 : index
    %246 = vector.load %arg6[%c0_79, %c0_80] : memref<128x128xf32, #tpu.memory_space<vmem>>, vector<128x128xf32>
    %cst_81 = arith.constant dense<0.000000e+00> : vector<8x128xf32>
    %247 = tpu.matmul %212, %246, %cst_81 {dimension_numbers = #tpu.dot_dimension_numbers<[1], [0], [0], [1], [0, 0, 1, 1], [], []>} : vector<8x128xf32>, vector<128x128xf32>, vector<8x128xf32> -> vector<8x128xf32>
    %248 = arith.addf %245, %247 : vector<8x128xf32>
    %249 = arith.mulf %248, %8 : vector<8x128xf32>
    %250 = math.tanh %249 : vector<8x128xf32>
    %cst_82 = arith.constant 1.000000e+00 : f32
    %251 = vector.broadcast %cst_82 : f32 to vector<8x128xf32>
    %252 = arith.addf %250, %251 : vector<8x128xf32>
    %cst_83 = arith.constant 5.000000e-01 : f32
    %253 = vector.broadcast %cst_83 : f32 to vector<8x128xf32>
    %254 = arith.mulf %253, %252 : vector<8x128xf32>
    %255 = arith.select %5, %250, %254 : vector<8x128xi1>, vector<8x128xf32>
    %256 = vector.extract_strided_slice %255 {offsets = [0, 64], sizes = [8, 64], strides = [1, 1]} : vector<8x128xf32> to vector<8x64xf32>
    %257 = vector.extract_strided_slice %255 {offsets = [0, 0], sizes = [8, 64], strides = [1, 1]} : vector<8x128xf32> to vector<8x64xf32>
    %258 = tpu.concatenate %256, %257 in 1 : vector<8x64xf32>, vector<8x64xf32> -> vector<8x128xf32>
    %259 = arith.mulf %255, %258 : vector<8x128xf32>
    %260 = arith.mulf %255, %207 : vector<8x128xf32>
    %261 = vector.extract_strided_slice %259 {offsets = [0, 96], sizes = [8, 32], strides = [1, 1]} : vector<8x128xf32> to vector<8x32xf32>
    %262 = vector.extract_strided_slice %259 {offsets = [0, 0], sizes = [8, 96], strides = [1, 1]} : vector<8x128xf32> to vector<8x96xf32>
    %263 = tpu.concatenate %261, %262 in 1 : vector<8x32xf32>, vector<8x96xf32> -> vector<8x128xf32>
    %264 = arith.addf %260, %263 : vector<8x128xf32>
    %265 = math.tanh %264 : vector<8x128xf32>
    %266 = vector.extract_strided_slice %265 {offsets = [0, 64], sizes = [8, 64], strides = [1, 1]} : vector<8x128xf32> to vector<8x64xf32>
    %267 = vector.extract_strided_slice %265 {offsets = [0, 0], sizes = [8, 64], strides = [1, 1]} : vector<8x128xf32> to vector<8x64xf32>
    %268 = tpu.concatenate %266, %267 in 1 : vector<8x64xf32>, vector<8x64xf32> -> vector<8x128xf32>
    %269 = arith.mulf %255, %268 : vector<8x128xf32>
    %c5_i32 = arith.constant 5 : i32
    %c8_i32_84 = arith.constant 8 : i32
    %270 = arith.muli %c5_i32, %c8_i32_84 : i32
    %271 = tpu.assume_multiple %270, 8 : i32
    %272 = arith.index_cast %271 : i32 to index
    %c0_85 = arith.constant 0 : index
    %273 = vector.load %arg11[%272, %c0_85] : memref<64x128xf32, #tpu.memory_space<vmem>>, vector<8x128xf32>
    %c0_86 = arith.constant 0 : index
    %c0_87 = arith.constant 0 : index
    %274 = vector.load %arg3[%c0_86, %c0_87] : memref<128x128xf32, #tpu.memory_space<vmem>>, vector<128x128xf32>
    %cst_88 = arith.constant dense<0.000000e+00> : vector<8x128xf32>
    %275 = tpu.matmul %240, %274, %cst_88 {dimension_numbers = #tpu.dot_dimension_numbers<[1], [0], [0], [1], [0, 0, 1, 1], [], []>} : vector<8x128xf32>, vector<128x128xf32>, vector<8x128xf32> -> vector<8x128xf32>
    %276 = arith.addf %273, %275 : vector<8x128xf32>
    %277 = arith.mulf %276, %8 : vector<8x128xf32>
    %278 = math.tanh %277 : vector<8x128xf32>
    %cst_89 = arith.constant 1.000000e+00 : f32
    %279 = vector.broadcast %cst_89 : f32 to vector<8x128xf32>
    %280 = arith.addf %278, %279 : vector<8x128xf32>
    %cst_90 = arith.constant 5.000000e-01 : f32
    %281 = vector.broadcast %cst_90 : f32 to vector<8x128xf32>
    %282 = arith.mulf %281, %280 : vector<8x128xf32>
    %283 = arith.select %5, %278, %282 : vector<8x128xi1>, vector<8x128xf32>
    %284 = vector.extract_strided_slice %283 {offsets = [0, 64], sizes = [8, 64], strides = [1, 1]} : vector<8x128xf32> to vector<8x64xf32>
    %285 = vector.extract_strided_slice %283 {offsets = [0, 0], sizes = [8, 64], strides = [1, 1]} : vector<8x128xf32> to vector<8x64xf32>
    %286 = tpu.concatenate %284, %285 in 1 : vector<8x64xf32>, vector<8x64xf32> -> vector<8x128xf32>
    %287 = arith.mulf %283, %286 : vector<8x128xf32>
    %288 = arith.mulf %283, %235 : vector<8x128xf32>
    %289 = vector.extract_strided_slice %287 {offsets = [0, 96], sizes = [8, 32], strides = [1, 1]} : vector<8x128xf32> to vector<8x32xf32>
    %290 = vector.extract_strided_slice %287 {offsets = [0, 0], sizes = [8, 96], strides = [1, 1]} : vector<8x128xf32> to vector<8x96xf32>
    %291 = tpu.concatenate %289, %290 in 1 : vector<8x32xf32>, vector<8x96xf32> -> vector<8x128xf32>
    %292 = arith.addf %288, %291 : vector<8x128xf32>
    %293 = math.tanh %292 : vector<8x128xf32>
    %294 = vector.extract_strided_slice %293 {offsets = [0, 64], sizes = [8, 64], strides = [1, 1]} : vector<8x128xf32> to vector<8x64xf32>
    %295 = vector.extract_strided_slice %293 {offsets = [0, 0], sizes = [8, 64], strides = [1, 1]} : vector<8x128xf32> to vector<8x64xf32>
    %296 = tpu.concatenate %294, %295 in 1 : vector<8x64xf32>, vector<8x64xf32> -> vector<8x128xf32>
    %297 = arith.mulf %283, %296 : vector<8x128xf32>
    %c0_91 = arith.constant 0 : index
    %c0_92 = arith.constant 0 : index
    %298 = vector.load %arg5[%c0_91, %c0_92] : memref<128x128xf32, #tpu.memory_space<vmem>>, vector<128x128xf32>
    %cst_93 = arith.constant dense<0.000000e+00> : vector<8x128xf32>
    %299 = tpu.matmul %240, %298, %cst_93 {dimension_numbers = #tpu.dot_dimension_numbers<[1], [0], [0], [1], [0, 0, 1, 1], [], []>} : vector<8x128xf32>, vector<128x128xf32>, vector<8x128xf32> -> vector<8x128xf32>
    %c0_94 = arith.constant 0 : index
    %c0_95 = arith.constant 0 : index
    %300 = vector.load %arg7[%c0_94, %c0_95] : memref<1x128xf32, #tpu.memory_space<vmem>>, vector<1x128xf32>
    %301 = vector.broadcast %300 : vector<1x128xf32> to vector<8x128xf32>
    %302 = arith.addf %299, %301 : vector<8x128xf32>
    %c0_96 = arith.constant 0 : index
    %c0_97 = arith.constant 0 : index
    %303 = vector.load %arg6[%c0_96, %c0_97] : memref<128x128xf32, #tpu.memory_space<vmem>>, vector<128x128xf32>
    %cst_98 = arith.constant dense<0.000000e+00> : vector<8x128xf32>
    %304 = tpu.matmul %269, %303, %cst_98 {dimension_numbers = #tpu.dot_dimension_numbers<[1], [0], [0], [1], [0, 0, 1, 1], [], []>} : vector<8x128xf32>, vector<128x128xf32>, vector<8x128xf32> -> vector<8x128xf32>
    %305 = arith.addf %302, %304 : vector<8x128xf32>
    %306 = arith.mulf %305, %8 : vector<8x128xf32>
    %307 = math.tanh %306 : vector<8x128xf32>
    %cst_99 = arith.constant 1.000000e+00 : f32
    %308 = vector.broadcast %cst_99 : f32 to vector<8x128xf32>
    %309 = arith.addf %307, %308 : vector<8x128xf32>
    %cst_100 = arith.constant 5.000000e-01 : f32
    %310 = vector.broadcast %cst_100 : f32 to vector<8x128xf32>
    %311 = arith.mulf %310, %309 : vector<8x128xf32>
    %312 = arith.select %5, %307, %311 : vector<8x128xi1>, vector<8x128xf32>
    %313 = vector.extract_strided_slice %312 {offsets = [0, 64], sizes = [8, 64], strides = [1, 1]} : vector<8x128xf32> to vector<8x64xf32>
    %314 = vector.extract_strided_slice %312 {offsets = [0, 0], sizes = [8, 64], strides = [1, 1]} : vector<8x128xf32> to vector<8x64xf32>
    %315 = tpu.concatenate %313, %314 in 1 : vector<8x64xf32>, vector<8x64xf32> -> vector<8x128xf32>
    %316 = arith.mulf %312, %315 : vector<8x128xf32>
    %317 = arith.mulf %312, %264 : vector<8x128xf32>
    %318 = vector.extract_strided_slice %316 {offsets = [0, 96], sizes = [8, 32], strides = [1, 1]} : vector<8x128xf32> to vector<8x32xf32>
    %319 = vector.extract_strided_slice %316 {offsets = [0, 0], sizes = [8, 96], strides = [1, 1]} : vector<8x128xf32> to vector<8x96xf32>
    %320 = tpu.concatenate %318, %319 in 1 : vector<8x32xf32>, vector<8x96xf32> -> vector<8x128xf32>
    %321 = arith.addf %317, %320 : vector<8x128xf32>
    %322 = math.tanh %321 : vector<8x128xf32>
    %323 = vector.extract_strided_slice %322 {offsets = [0, 64], sizes = [8, 64], strides = [1, 1]} : vector<8x128xf32> to vector<8x64xf32>
    %324 = vector.extract_strided_slice %322 {offsets = [0, 0], sizes = [8, 64], strides = [1, 1]} : vector<8x128xf32> to vector<8x64xf32>
    %325 = tpu.concatenate %323, %324 in 1 : vector<8x64xf32>, vector<8x64xf32> -> vector<8x128xf32>
    %326 = arith.mulf %312, %325 : vector<8x128xf32>
    %c6_i32 = arith.constant 6 : i32
    %c8_i32_101 = arith.constant 8 : i32
    %327 = arith.muli %c6_i32, %c8_i32_101 : i32
    %328 = tpu.assume_multiple %327, 8 : i32
    %329 = arith.index_cast %328 : i32 to index
    %c0_102 = arith.constant 0 : index
    %330 = vector.load %arg11[%329, %c0_102] : memref<64x128xf32, #tpu.memory_space<vmem>>, vector<8x128xf32>
    %c0_103 = arith.constant 0 : index
    %c0_104 = arith.constant 0 : index
    %331 = vector.load %arg3[%c0_103, %c0_104] : memref<128x128xf32, #tpu.memory_space<vmem>>, vector<128x128xf32>
    %cst_105 = arith.constant dense<0.000000e+00> : vector<8x128xf32>
    %332 = tpu.matmul %297, %331, %cst_105 {dimension_numbers = #tpu.dot_dimension_numbers<[1], [0], [0], [1], [0, 0, 1, 1], [], []>} : vector<8x128xf32>, vector<128x128xf32>, vector<8x128xf32> -> vector<8x128xf32>
    %333 = arith.addf %330, %332 : vector<8x128xf32>
    %334 = arith.mulf %333, %8 : vector<8x128xf32>
    %335 = math.tanh %334 : vector<8x128xf32>
    %cst_106 = arith.constant 1.000000e+00 : f32
    %336 = vector.broadcast %cst_106 : f32 to vector<8x128xf32>
    %337 = arith.addf %335, %336 : vector<8x128xf32>
    %cst_107 = arith.constant 5.000000e-01 : f32
    %338 = vector.broadcast %cst_107 : f32 to vector<8x128xf32>
    %339 = arith.mulf %338, %337 : vector<8x128xf32>
    %340 = arith.select %5, %335, %339 : vector<8x128xi1>, vector<8x128xf32>
    %341 = vector.extract_strided_slice %340 {offsets = [0, 64], sizes = [8, 64], strides = [1, 1]} : vector<8x128xf32> to vector<8x64xf32>
    %342 = vector.extract_strided_slice %340 {offsets = [0, 0], sizes = [8, 64], strides = [1, 1]} : vector<8x128xf32> to vector<8x64xf32>
    %343 = tpu.concatenate %341, %342 in 1 : vector<8x64xf32>, vector<8x64xf32> -> vector<8x128xf32>
    %344 = arith.mulf %340, %343 : vector<8x128xf32>
    %345 = arith.mulf %340, %292 : vector<8x128xf32>
    %346 = vector.extract_strided_slice %344 {offsets = [0, 96], sizes = [8, 32], strides = [1, 1]} : vector<8x128xf32> to vector<8x32xf32>
    %347 = vector.extract_strided_slice %344 {offsets = [0, 0], sizes = [8, 96], strides = [1, 1]} : vector<8x128xf32> to vector<8x96xf32>
    %348 = tpu.concatenate %346, %347 in 1 : vector<8x32xf32>, vector<8x96xf32> -> vector<8x128xf32>
    %349 = arith.addf %345, %348 : vector<8x128xf32>
    %350 = math.tanh %349 : vector<8x128xf32>
    %351 = vector.extract_strided_slice %350 {offsets = [0, 64], sizes = [8, 64], strides = [1, 1]} : vector<8x128xf32> to vector<8x64xf32>
    %352 = vector.extract_strided_slice %350 {offsets = [0, 0], sizes = [8, 64], strides = [1, 1]} : vector<8x128xf32> to vector<8x64xf32>
    %353 = tpu.concatenate %351, %352 in 1 : vector<8x64xf32>, vector<8x64xf32> -> vector<8x128xf32>
    %354 = arith.mulf %340, %353 : vector<8x128xf32>
    %c0_108 = arith.constant 0 : index
    %c0_109 = arith.constant 0 : index
    %355 = vector.load %arg5[%c0_108, %c0_109] : memref<128x128xf32, #tpu.memory_space<vmem>>, vector<128x128xf32>
    %cst_110 = arith.constant dense<0.000000e+00> : vector<8x128xf32>
    %356 = tpu.matmul %297, %355, %cst_110 {dimension_numbers = #tpu.dot_dimension_numbers<[1], [0], [0], [1], [0, 0, 1, 1], [], []>} : vector<8x128xf32>, vector<128x128xf32>, vector<8x128xf32> -> vector<8x128xf32>
    %c0_111 = arith.constant 0 : index
    %c0_112 = arith.constant 0 : index
    %357 = vector.load %arg7[%c0_111, %c0_112] : memref<1x128xf32, #tpu.memory_space<vmem>>, vector<1x128xf32>
    %358 = vector.broadcast %357 : vector<1x128xf32> to vector<8x128xf32>
    %359 = arith.addf %356, %358 : vector<8x128xf32>
    %c0_113 = arith.constant 0 : index
    %c0_114 = arith.constant 0 : index
    %360 = vector.load %arg6[%c0_113, %c0_114] : memref<128x128xf32, #tpu.memory_space<vmem>>, vector<128x128xf32>
    %cst_115 = arith.constant dense<0.000000e+00> : vector<8x128xf32>
    %361 = tpu.matmul %326, %360, %cst_115 {dimension_numbers = #tpu.dot_dimension_numbers<[1], [0], [0], [1], [0, 0, 1, 1], [], []>} : vector<8x128xf32>, vector<128x128xf32>, vector<8x128xf32> -> vector<8x128xf32>
    %362 = arith.addf %359, %361 : vector<8x128xf32>
    %363 = arith.mulf %362, %8 : vector<8x128xf32>
    %364 = math.tanh %363 : vector<8x128xf32>
    %cst_116 = arith.constant 1.000000e+00 : f32
    %365 = vector.broadcast %cst_116 : f32 to vector<8x128xf32>
    %366 = arith.addf %364, %365 : vector<8x128xf32>
    %cst_117 = arith.constant 5.000000e-01 : f32
    %367 = vector.broadcast %cst_117 : f32 to vector<8x128xf32>
    %368 = arith.mulf %367, %366 : vector<8x128xf32>
    %369 = arith.select %5, %364, %368 : vector<8x128xi1>, vector<8x128xf32>
    %370 = vector.extract_strided_slice %369 {offsets = [0, 64], sizes = [8, 64], strides = [1, 1]} : vector<8x128xf32> to vector<8x64xf32>
    %371 = vector.extract_strided_slice %369 {offsets = [0, 0], sizes = [8, 64], strides = [1, 1]} : vector<8x128xf32> to vector<8x64xf32>
    %372 = tpu.concatenate %370, %371 in 1 : vector<8x64xf32>, vector<8x64xf32> -> vector<8x128xf32>
    %373 = arith.mulf %369, %372 : vector<8x128xf32>
    %374 = arith.mulf %369, %321 : vector<8x128xf32>
    %375 = vector.extract_strided_slice %373 {offsets = [0, 96], sizes = [8, 32], strides = [1, 1]} : vector<8x128xf32> to vector<8x32xf32>
    %376 = vector.extract_strided_slice %373 {offsets = [0, 0], sizes = [8, 96], strides = [1, 1]} : vector<8x128xf32> to vector<8x96xf32>
    %377 = tpu.concatenate %375, %376 in 1 : vector<8x32xf32>, vector<8x96xf32> -> vector<8x128xf32>
    %378 = arith.addf %374, %377 : vector<8x128xf32>
    %379 = math.tanh %378 : vector<8x128xf32>
    %380 = vector.extract_strided_slice %379 {offsets = [0, 64], sizes = [8, 64], strides = [1, 1]} : vector<8x128xf32> to vector<8x64xf32>
    %381 = vector.extract_strided_slice %379 {offsets = [0, 0], sizes = [8, 64], strides = [1, 1]} : vector<8x128xf32> to vector<8x64xf32>
    %382 = tpu.concatenate %380, %381 in 1 : vector<8x64xf32>, vector<8x64xf32> -> vector<8x128xf32>
    %383 = arith.mulf %369, %382 : vector<8x128xf32>
    %c7_i32 = arith.constant 7 : i32
    %c8_i32_118 = arith.constant 8 : i32
    %384 = arith.muli %c7_i32, %c8_i32_118 : i32
    %385 = tpu.assume_multiple %384, 8 : i32
    %386 = arith.index_cast %385 : i32 to index
    %c0_119 = arith.constant 0 : index
    %387 = vector.load %arg11[%386, %c0_119] : memref<64x128xf32, #tpu.memory_space<vmem>>, vector<8x128xf32>
    %c0_120 = arith.constant 0 : index
    %c0_121 = arith.constant 0 : index
    %388 = vector.load %arg3[%c0_120, %c0_121] : memref<128x128xf32, #tpu.memory_space<vmem>>, vector<128x128xf32>
    %cst_122 = arith.constant dense<0.000000e+00> : vector<8x128xf32>
    %389 = tpu.matmul %354, %388, %cst_122 {dimension_numbers = #tpu.dot_dimension_numbers<[1], [0], [0], [1], [0, 0, 1, 1], [], []>} : vector<8x128xf32>, vector<128x128xf32>, vector<8x128xf32> -> vector<8x128xf32>
    %390 = arith.addf %387, %389 : vector<8x128xf32>
    %391 = arith.mulf %390, %8 : vector<8x128xf32>
    %392 = math.tanh %391 : vector<8x128xf32>
    %cst_123 = arith.constant 1.000000e+00 : f32
    %393 = vector.broadcast %cst_123 : f32 to vector<8x128xf32>
    %394 = arith.addf %392, %393 : vector<8x128xf32>
    %cst_124 = arith.constant 5.000000e-01 : f32
    %395 = vector.broadcast %cst_124 : f32 to vector<8x128xf32>
    %396 = arith.mulf %395, %394 : vector<8x128xf32>
    %397 = arith.select %5, %392, %396 : vector<8x128xi1>, vector<8x128xf32>
    %398 = vector.extract_strided_slice %397 {offsets = [0, 64], sizes = [8, 64], strides = [1, 1]} : vector<8x128xf32> to vector<8x64xf32>
    %399 = vector.extract_strided_slice %397 {offsets = [0, 0], sizes = [8, 64], strides = [1, 1]} : vector<8x128xf32> to vector<8x64xf32>
    %400 = tpu.concatenate %398, %399 in 1 : vector<8x64xf32>, vector<8x64xf32> -> vector<8x128xf32>
    %401 = arith.mulf %397, %400 : vector<8x128xf32>
    %402 = arith.mulf %397, %349 : vector<8x128xf32>
    %403 = vector.extract_strided_slice %401 {offsets = [0, 96], sizes = [8, 32], strides = [1, 1]} : vector<8x128xf32> to vector<8x32xf32>
    %404 = vector.extract_strided_slice %401 {offsets = [0, 0], sizes = [8, 96], strides = [1, 1]} : vector<8x128xf32> to vector<8x96xf32>
    %405 = tpu.concatenate %403, %404 in 1 : vector<8x32xf32>, vector<8x96xf32> -> vector<8x128xf32>
    %406 = arith.addf %402, %405 : vector<8x128xf32>
    %407 = math.tanh %406 : vector<8x128xf32>
    %408 = vector.extract_strided_slice %407 {offsets = [0, 64], sizes = [8, 64], strides = [1, 1]} : vector<8x128xf32> to vector<8x64xf32>
    %409 = vector.extract_strided_slice %407 {offsets = [0, 0], sizes = [8, 64], strides = [1, 1]} : vector<8x128xf32> to vector<8x64xf32>
    %410 = tpu.concatenate %408, %409 in 1 : vector<8x64xf32>, vector<8x64xf32> -> vector<8x128xf32>
    %411 = arith.mulf %397, %410 : vector<8x128xf32>
    %c0_125 = arith.constant 0 : index
    %c0_126 = arith.constant 0 : index
    %412 = vector.load %arg5[%c0_125, %c0_126] : memref<128x128xf32, #tpu.memory_space<vmem>>, vector<128x128xf32>
    %cst_127 = arith.constant dense<0.000000e+00> : vector<8x128xf32>
    %413 = tpu.matmul %354, %412, %cst_127 {dimension_numbers = #tpu.dot_dimension_numbers<[1], [0], [0], [1], [0, 0, 1, 1], [], []>} : vector<8x128xf32>, vector<128x128xf32>, vector<8x128xf32> -> vector<8x128xf32>
    %c0_128 = arith.constant 0 : index
    %c0_129 = arith.constant 0 : index
    %414 = vector.load %arg7[%c0_128, %c0_129] : memref<1x128xf32, #tpu.memory_space<vmem>>, vector<1x128xf32>
    %415 = vector.broadcast %414 : vector<1x128xf32> to vector<8x128xf32>
    %416 = arith.addf %413, %415 : vector<8x128xf32>
    %c0_130 = arith.constant 0 : index
    %c0_131 = arith.constant 0 : index
    %417 = vector.load %arg6[%c0_130, %c0_131] : memref<128x128xf32, #tpu.memory_space<vmem>>, vector<128x128xf32>
    %cst_132 = arith.constant dense<0.000000e+00> : vector<8x128xf32>
    %418 = tpu.matmul %383, %417, %cst_132 {dimension_numbers = #tpu.dot_dimension_numbers<[1], [0], [0], [1], [0, 0, 1, 1], [], []>} : vector<8x128xf32>, vector<128x128xf32>, vector<8x128xf32> -> vector<8x128xf32>
    %419 = arith.addf %416, %418 : vector<8x128xf32>
    %420 = arith.mulf %419, %8 : vector<8x128xf32>
    %421 = math.tanh %420 : vector<8x128xf32>
    %cst_133 = arith.constant 1.000000e+00 : f32
    %422 = vector.broadcast %cst_133 : f32 to vector<8x128xf32>
    %423 = arith.addf %421, %422 : vector<8x128xf32>
    %cst_134 = arith.constant 5.000000e-01 : f32
    %424 = vector.broadcast %cst_134 : f32 to vector<8x128xf32>
    %425 = arith.mulf %424, %423 : vector<8x128xf32>
    %426 = arith.select %5, %421, %425 : vector<8x128xi1>, vector<8x128xf32>
    %427 = vector.extract_strided_slice %426 {offsets = [0, 64], sizes = [8, 64], strides = [1, 1]} : vector<8x128xf32> to vector<8x64xf32>
    %428 = vector.extract_strided_slice %426 {offsets = [0, 0], sizes = [8, 64], strides = [1, 1]} : vector<8x128xf32> to vector<8x64xf32>
    %429 = tpu.concatenate %427, %428 in 1 : vector<8x64xf32>, vector<8x64xf32> -> vector<8x128xf32>
    %430 = arith.mulf %426, %429 : vector<8x128xf32>
    %431 = arith.mulf %426, %378 : vector<8x128xf32>
    %432 = vector.extract_strided_slice %430 {offsets = [0, 96], sizes = [8, 32], strides = [1, 1]} : vector<8x128xf32> to vector<8x32xf32>
    %433 = vector.extract_strided_slice %430 {offsets = [0, 0], sizes = [8, 96], strides = [1, 1]} : vector<8x128xf32> to vector<8x96xf32>
    %434 = tpu.concatenate %432, %433 in 1 : vector<8x32xf32>, vector<8x96xf32> -> vector<8x128xf32>
    %435 = arith.addf %431, %434 : vector<8x128xf32>
    %436 = math.tanh %435 : vector<8x128xf32>
    %437 = vector.extract_strided_slice %436 {offsets = [0, 64], sizes = [8, 64], strides = [1, 1]} : vector<8x128xf32> to vector<8x64xf32>
    %438 = vector.extract_strided_slice %436 {offsets = [0, 0], sizes = [8, 64], strides = [1, 1]} : vector<8x128xf32> to vector<8x64xf32>
    %439 = tpu.concatenate %437, %438 in 1 : vector<8x64xf32>, vector<8x64xf32> -> vector<8x128xf32>
    %440 = arith.mulf %426, %439 : vector<8x128xf32>
    %c7_i32_135 = arith.constant 7 : i32
    %c0_136 = arith.constant 0 : index
    %c0_137 = arith.constant 0 : index
    %441 = vector.load %arg5[%c0_136, %c0_137] : memref<128x128xf32, #tpu.memory_space<vmem>>, vector<128x128xf32>
    %cst_138 = arith.constant dense<0.000000e+00> : vector<8x128xf32>
    %442 = tpu.matmul %411, %441, %cst_138 {dimension_numbers = #tpu.dot_dimension_numbers<[1], [0], [0], [1], [0, 0, 1, 1], [], []>} : vector<8x128xf32>, vector<128x128xf32>, vector<8x128xf32> -> vector<8x128xf32>
    %c0_139 = arith.constant 0 : index
    %c0_140 = arith.constant 0 : index
    %443 = vector.load %arg7[%c0_139, %c0_140] : memref<1x128xf32, #tpu.memory_space<vmem>>, vector<1x128xf32>
    %444 = vector.broadcast %443 : vector<1x128xf32> to vector<8x128xf32>
    %445 = arith.addf %442, %444 : vector<8x128xf32>
    %c0_141 = arith.constant 0 : index
    %c0_142 = arith.constant 0 : index
    %446 = vector.load %arg6[%c0_141, %c0_142] : memref<128x128xf32, #tpu.memory_space<vmem>>, vector<128x128xf32>
    %cst_143 = arith.constant dense<0.000000e+00> : vector<8x128xf32>
    %447 = tpu.matmul %440, %446, %cst_143 {dimension_numbers = #tpu.dot_dimension_numbers<[1], [0], [0], [1], [0, 0, 1, 1], [], []>} : vector<8x128xf32>, vector<128x128xf32>, vector<8x128xf32> -> vector<8x128xf32>
    %448 = arith.addf %445, %447 : vector<8x128xf32>
    %449 = arith.mulf %448, %8 : vector<8x128xf32>
    %450 = math.tanh %449 : vector<8x128xf32>
    %cst_144 = arith.constant 1.000000e+00 : f32
    %451 = vector.broadcast %cst_144 : f32 to vector<8x128xf32>
    %452 = arith.addf %450, %451 : vector<8x128xf32>
    %cst_145 = arith.constant 5.000000e-01 : f32
    %453 = vector.broadcast %cst_145 : f32 to vector<8x128xf32>
    %454 = arith.mulf %453, %452 : vector<8x128xf32>
    %455 = arith.select %5, %450, %454 : vector<8x128xi1>, vector<8x128xf32>
    %456 = vector.extract_strided_slice %455 {offsets = [0, 64], sizes = [8, 64], strides = [1, 1]} : vector<8x128xf32> to vector<8x64xf32>
    %457 = vector.extract_strided_slice %455 {offsets = [0, 0], sizes = [8, 64], strides = [1, 1]} : vector<8x128xf32> to vector<8x64xf32>
    %458 = tpu.concatenate %456, %457 in 1 : vector<8x64xf32>, vector<8x64xf32> -> vector<8x128xf32>
    %459 = arith.mulf %455, %458 : vector<8x128xf32>
    %460 = arith.mulf %455, %435 : vector<8x128xf32>
    %461 = vector.extract_strided_slice %459 {offsets = [0, 96], sizes = [8, 32], strides = [1, 1]} : vector<8x128xf32> to vector<8x32xf32>
    %462 = vector.extract_strided_slice %459 {offsets = [0, 0], sizes = [8, 96], strides = [1, 1]} : vector<8x128xf32> to vector<8x96xf32>
    %463 = tpu.concatenate %461, %462 in 1 : vector<8x32xf32>, vector<8x96xf32> -> vector<8x128xf32>
    %464 = arith.addf %460, %463 : vector<8x128xf32>
    %465 = math.tanh %464 : vector<8x128xf32>
    %466 = vector.extract_strided_slice %465 {offsets = [0, 64], sizes = [8, 64], strides = [1, 1]} : vector<8x128xf32> to vector<8x64xf32>
    %467 = vector.extract_strided_slice %465 {offsets = [0, 0], sizes = [8, 64], strides = [1, 1]} : vector<8x128xf32> to vector<8x64xf32>
    %468 = tpu.concatenate %466, %467 in 1 : vector<8x64xf32>, vector<8x64xf32> -> vector<8x128xf32>
    %469 = arith.mulf %455, %468 : vector<8x128xf32>
    %c0_146 = arith.constant 0 : index
    %c0_147 = arith.constant 0 : index
    %470 = vector.load %arg8[%c0_146, %c0_147] : memref<128x128xf32, #tpu.memory_space<vmem>>, vector<128x128xf32>
    %cst_148 = arith.constant dense<0.000000e+00> : vector<8x128xf32>
    %471 = tpu.matmul %469, %470, %cst_148 {dimension_numbers = #tpu.dot_dimension_numbers<[1], [0], [0], [1], [0, 0, 1, 1], [], []>} : vector<8x128xf32>, vector<128x128xf32>, vector<8x128xf32> -> vector<8x128xf32>
    %c0_149 = arith.constant 0 : index
    %c0_150 = arith.constant 0 : index
    %472 = vector.load %arg9[%c0_149, %c0_150] : memref<1x128xf32, #tpu.memory_space<vmem>>, vector<1x128xf32>
    %473 = vector.broadcast %472 : vector<1x128xf32> to vector<8x128xf32>
    %474 = arith.addf %471, %473 : vector<8x128xf32>
    %c0_151 = arith.constant 0 : index
    %c0_152 = arith.constant 0 : index
    %475 = vector.load %arg10[%c0_151, %c0_152] : memref<8x128xf32, #tpu.memory_space<vmem>>, vector<8x128xf32>
    tpu.vector_store %arg10[%c0_151, %c0_152], %474 {strides = array<i32>} : memref<8x128xf32, #tpu.memory_space<vmem>>, vector<8x128xf32>,
    return
  }
  func.func @transform_0(%arg0: i32) -> (i32, i32) {
    %c0_i32 = arith.constant 0 : i32
    %c0_i32_0 = arith.constant 0 : i32
    return %arg0, %c0_i32 : i32, i32
  }
  func.func @transform_1(%arg0: i32) -> (i32, i32) {
    %c0_i32 = arith.constant 0 : i32
    %c0_i32_0 = arith.constant 0 : i32
    %c0_i32_1 = arith.constant 0 : i32
    return %c0_i32, %c0_i32_0 : i32, i32
  }
  func.func @transform_2(%arg0: i32) -> (i32, i32) {
    %c0_i32 = arith.constant 0 : i32
    %c0_i32_0 = arith.constant 0 : i32
    %c0_i32_1 = arith.constant 0 : i32
    return %c0_i32, %c0_i32_0 : i32, i32
  }
  func.func @transform_3(%arg0: i32) -> (i32, i32) {
    %c0_i32 = arith.constant 0 : i32
    %c0_i32_0 = arith.constant 0 : i32
    %c0_i32_1 = arith.constant 0 : i32
    return %c0_i32, %c0_i32_0 : i32, i32
  }
  func.func @transform_4(%arg0: i32) -> (i32, i32) {
    %c0_i32 = arith.constant 0 : i32
    %c0_i32_0 = arith.constant 0 : i32
    %c0_i32_1 = arith.constant 0 : i32
    return %c0_i32, %c0_i32_0 : i32, i32
  }
  func.func @transform_5(%arg0: i32) -> (i32, i32) {
    %c0_i32 = arith.constant 0 : i32
    %c0_i32_0 = arith.constant 0 : i32
    %c0_i32_1 = arith.constant 0 : i32
    return %c0_i32, %c0_i32_0 : i32, i32
  }
  func.func @transform_6(%arg0: i32) -> (i32, i32) {
    %c0_i32 = arith.constant 0 : i32
    %c0_i32_0 = arith.constant 0 : i32
    %c0_i32_1 = arith.constant 0 : i32
    return %c0_i32, %c0_i32_0 : i32, i32
  }
  func.func @transform_7(%arg0: i32) -> (i32, i32) {
    %c0_i32 = arith.constant 0 : i32
    %c0_i32_0 = arith.constant 0 : i32
    %c0_i32_1 = arith.constant 0 : i32
    return %c0_i32, %c0_i32_0 : i32, i32
  }
  func.func @transform_8(%arg0: i32) -> (i32, i32) {
    %c0_i32 = arith.constant 0 : i32
    %c0_i32_0 = arith.constant 0 : i32
    %c0_i32_1 = arith.constant 0 : i32
    return %c0_i32, %c0_i32_0 : i32, i32
  }
  func.func @transform_9(%arg0: i32) -> (i32, i32) {
    %c0_i32 = arith.constant 0 : i32
    %c0_i32_0 = arith.constant 0 : i32
    return %arg0, %c0_i32 : i32, i32
  }
}

</mosaic_0001>

<bundles_post_ra>
// kernel: tpu_custom_call.1
= control target key start
LH: loop header
LB: loop body
LE: loop exit
PB: predicated region body
PF: predicated region fallthrough
CT: control target
= control target key end

     0   :  { %14 = vsyncpa [#allocation4], 0  ;;  %s2165_s0 = inlined_call_operand.vmem [shape: f32[64,4], index: 0, kind: input, shape index: {}]   ;;  %s2166_s1 = inlined_call_operand.vmem [shape: f32[4,128], index: 1, kind: input, shape index: {}]   ;;  %s2167_s2 = inlined_call_operand.hbm [shape: f32[128,128], index: 2, kind: input, shape index: {}]   ;;  %s2168_s3 = inlined_call_operand.vmem [shape: f32[1,128], index: 3, kind: input, shape index: {}]   ;;  %s2169_s4 = inlined_call_operand.hbm [shape: f32[128,128], index: 4, kind: input, shape index: {}]   ;;  %s2170_s5 = inlined_call_operand.hbm [shape: f32[128,128], index: 5, kind: input, shape index: {}]   ;;  %s2171_s6 = inlined_call_operand.vmem [shape: f32[1,128], index: 6, kind: input, shape index: {}]   ;;  %s2172_s7 = inlined_call_operand.hbm [shape: f32[128,128], index: 7, kind: input, shape index: {}]   ;;  %s2173_s8 = inlined_call_operand.vmem [shape: f32[1,128], index: 8, kind: input, shape index: {}]   ;;  %s2174_s9 = inlined_call_operand.hbm [shape: f32[8,128], index: 9, kind: output, shape index: {}]  }
   0x1   :  { %15 = vsyncpa [#allocation7], 0 }
   0x2   :  { %16 = vsyncpa [#allocation10], 0 }
   0x3   :  { %17 = vsyncpa [#allocation5], 0  ;;  %s41_s11 = sshll.u32 %s2169_s4, 4  ;;  %s1425_s12 = smov [#allocation6]   ;;  %s42_s11 = int_to_ptr.hbm [resolvable:$true] %s41_s11 }
   0x4   :  { %s43_s13 = sshll.u32 %s1425_s12, 4  ;;  %s26_s16 = sshll.u32 %s2167_s2, 4  ;;  %s44_s13 = int_to_ptr.vmem [resolvable:$true] %s43_s13  ;;  %s27_s16 = int_to_ptr.hbm [resolvable:$true] %s26_s16 }
   0x5   :  { %s1426_s17 = smov 128   ;;  %s1427_s18 = smov 8  }
   0x6   :  { %49 = dma.hbm_to_vmem [thread:$0]  %s42_s11, 2048, %s44_s13, [#allocation7], %s1426_s17, %s1426_s17, %s1427_s18  }
   0x7   :  { %s1428_s19 = smov [#allocation3]   ;;  %s54_s23 = sshll.u32 %s2170_s5, 4  ;;  %s55_s23 = int_to_ptr.hbm [resolvable:$true] %s54_s23 }
   0x8   :  { %s28_s20 = sshll.u32 %s1428_s19, 4  ;;  %s69_s25 = sshll.u32 %s2172_s7, 4  ;;  %s29_s20 = int_to_ptr.vmem [resolvable:$true] %s28_s20  ;;  %s70_s25 = int_to_ptr.hbm [resolvable:$true] %s69_s25 }
   0x9   :  { %34 = dma.hbm_to_vmem [thread:$0]  %s27_s16, 2048, %s29_s20, [#allocation4], %s1426_s17, %s1426_s17, %s1427_s18  }
   0xa   :  { %s1429_s26 = smov [#allocation8]   ;;  %s1430_s2 = smov [#allocation9]  }
   0xb   :  { %s56_s27 = sshll.u32 %s1429_s26, 4  ;;  %s71_s28 = sshll.u32 %s1430_s2, 4  ;;  %s57_s27 = int_to_ptr.vmem [resolvable:$true] %s56_s27  ;;  %s72_s28 = int_to_ptr.vmem [resolvable:$true] %s71_s28 }
   0xc   :  { %62 = dma.hbm_to_vmem [thread:$0]  %s55_s23, 2048, %s57_s27, [#allocation7], %s1426_s17, %s1426_s17, %s1427_s18  }
   0xd   :  { %77 = dma.hbm_to_vmem [thread:$0]  %s70_s25, 2048, %s72_s28, [#allocation10], %s1426_s17, %s1426_s17, %s1427_s18  }
   0xe   :  { %1417 = dma.done.wait [#allocation4], 2048  }
   0xf   :  { %1418 = vsyncadd [#allocation4], 4294965248 }
  0x10   :  { %1419 = dma.done.wait [#allocation7], 4096  }
  0x11   :  { %1420 = vsyncadd [#allocation7], 4294963200 }
  0x12   :  { %1421 = dma.done.wait [#allocation10], 2048  }
  0x13   :  { %1422 = vsyncadd [#allocation10], 4294965248  ;;  %v1498_v0 = vld [vmem:[#allocation3 + $0x78] sm:$0xff]  ;;  %v1500_v1 = vld [vmem:[#allocation3 + $0x70] sm:$0xff]  ;;  %vm140_vm0 = vcmask 1043456   ;;  %vm115_vm1 = vcmask 31744   ;;  %v96_v19 = vlaneseq }
  0x14   :  { %210 = vmatpush.msra.mxu1 %v1498_v0  ;;  %255 = vmatpush.msra.mxu2 %v1498_v0  ;;  %v1504_v2 = vld [vmem:[#allocation3 + $0x68] sm:$0xff]  ;;  %v1508_v3 = vld [vmem:[#allocation3 + $0x60] sm:$0xff]  ;;  %v1517_v6 = vld [vmem:[#allocation3 + $0x58] sm:$0xff]  ;;  %v1431_v18 = vmov 0.0   ;;  %v1432_v25 = vmov 0.5   ;;  %s1433_s11 = smov 64  }
  0x15   :  { %v110_v4 = vld [vmem:[%s2166_s1] sm:$0xf]  ;;  %v1522_v7 = vld [vmem:[#allocation3 + $0x50] sm:$0xff]  ;;  %v1526_v8 = vld [vmem:[#allocation3 + $0x48] sm:$0xff]  ;;  %v97_v20 = vand.u32 127, %v96_v19  ;;  %s1434_s12 = smov 32  }
  0x16   :  { %211 = vmatpush.msra.mxu1 %v1500_v1  ;;  %256 = vmatpush.msra.mxu2 %v1500_v1  ;;  %v102_v5 = vld [vmem:[%s2165_s0] sm:$0xff]  ;;  %v1534_v10 = vld [vmem:[#allocation3 + $0x38] sm:$0xff]  ;;  %v1538_v11 = vld [vmem:[#allocation3 + $0x30] sm:$0xff]  ;;  %s1435_s7 = smov [#allocation11]   ;;  %s1156_s10 = sshll.u32 %s2174_s9, 4  ;;  %s1157_s10 = int_to_ptr.hbm [resolvable:$true] %s1156_s10 }
  0x17   :  { %1168 = vmatpush.msk.msra.mxu0 %vm140_vm0, %v110_v4  ;;  %v1530_v9 = vld [vmem:[#allocation3 + $0x40] sm:$0xff]  ;;  %v1542_v12 = vld [vmem:[#allocation3 + $0x28] sm:$0xff]  ;;  %v1550_v14 = vld [vmem:[#allocation3 + $0x18] sm:$0xff]  ;;  %vm98_vm2 = vcmp.ge.s32.totalorder %v97_v20, 64  ;;  %vm99_vm3 = vcmp.lt.s32.totalorder %v97_v20, 96  ;;  %s1154_s29 = sshll.u32 %s1435_s7, 4  ;;  %s1155_s29 = int_to_ptr.vmem [resolvable:$true] %s1154_s29 }
  0x18   :  { %212 = vmatpush.msra.mxu1 %v1504_v2  ;;  %1169 = vmatmul.msk.f32.vlgmr.msra.gmra.mxu0 %vm115_vm1, %v102_v5  ;;  %v1546_v13 = vld [vmem:[#allocation3 + $0x20] sm:$0xff]  ;;  %v1554_v15 = vld [vmem:[#allocation3 + $0x10] sm:$0xff]  ;;  %v1558_v16 = vld [vmem:[#allocation3 + $0x8] sm:$0xff] }
  0x19   :  { %257 = vmatpush.msra.mxu2 %v1504_v2  ;;  %2189 = vst [vmem:[#allocation16_spill] sm:$0xff] %v1558_v16  ;;  %v1562_v17 = vld [vmem:[#allocation3] sm:$0xff]  ;;  %vm1592_vm4 = vmand %vm98_vm2, %vm99_vm3  ;;  %v1609_v36 = vld [vmem:[#allocation6 + $0x78] sm:$0xff] }
  0x1a   :  { %213 = vmatpush.msra.mxu1 %v1508_v3  ;;  %2190 = vst [vmem:[#allocation17_spill] sm:$0xff] %v1562_v17  ;;  %v1589_v21 = vld [vmem:[%s2168_s3] ss:$0 sm:$0xff]  ;;  %v1598_v26 = vsel %vm1592_vm4, 1.0, %v1432_v25  ;;  %v1611_v37 = vld [vmem:[#allocation6 + $0x70] sm:$0xff]  ;;  %318 = vmatpush.msra.mxu3 %v1609_v36  ;;  %v1614_v38 = vld [vmem:[#allocation8 + $0x78] sm:$0xff] }
  0x1b   :  { %258 = vmatpush.msra.mxu2 %v1508_v3  ;;  %2191 = vst [vmem:[#allocation18_spill] sm:$0xff] %v1589_v21  ;;  %v1616_v39 = vld [vmem:[#allocation6 + $0x68] sm:$0xff]  ;;  %v1619_v40 = vld [vmem:[#allocation8 + $0x70] sm:$0xff]  ;;  %462 = vmatpush.msrb.mxu0 %v1614_v38  ;;  %v1625_v42 = vld [vmem:[#allocation6 + $0x60] sm:$0xff] }
  0x1c   :  { %214 = vmatpush.msra.mxu1 %v1517_v6  ;;  %319 = vmatpush.msra.mxu3 %v1611_v37  ;;  %v1623_v41 = vld [vmem:[#allocation8 + $0x68] sm:$0xff]  ;;  %v1630_v43 = vld [vmem:[#allocation8 + $0x60] sm:$0xff]  ;;  %v1632_v44 = vld [vmem:[#allocation6 + $0x58] sm:$0xff] }
  0x1d   :  { %259 = vmatpush.msra.mxu2 %v1517_v6  ;;  %463 = vmatpush.msrb.mxu0 %v1619_v40  ;;  %v1637_v45 = vld [vmem:[#allocation8 + $0x58] sm:$0xff]  ;;  %v1639_v46 = vld [vmem:[#allocation6 + $0x50] sm:$0xff]  ;;  %v1646_v48 = vld [vmem:[#allocation6 + $0x48] sm:$0xff] }
  0x1e   :  { %215 = vmatpush.msra.mxu1 %v1522_v7  ;;  %320 = vmatpush.msra.mxu3 %v1616_v39  ;;  %v1644_v47 = vld [vmem:[#allocation8 + $0x50] sm:$0xff]  ;;  %v1651_v49 = vld [vmem:[#allocation8 + $0x48] sm:$0xff]  ;;  %v1653_v50 = vld [vmem:[#allocation6 + $0x40] sm:$0xff] }
  0x1f   :  { %260 = vmatpush.msra.mxu2 %v1522_v7  ;;  %464 = vmatpush.msrb.mxu0 %v1623_v41  ;;  %v1658_v51 = vld [vmem:[#allocation8 + $0x40] sm:$0xff]  ;;  %v1660_v52 = vld [vmem:[#allocation6 + $0x38] sm:$0xff]  ;;  %v1667_v54 = vld [vmem:[#allocation6 + $0x30] sm:$0xff] }
  0x20   :  { %216 = vmatpush.msra.mxu1 %v1526_v8  ;;  %321 = vmatpush.msra.mxu3 %v1625_v42  ;;  %v1665_v53 = vld [vmem:[#allocation8 + $0x38] sm:$0xff]  ;;  %v1672_v55 = vld [vmem:[#allocation8 + $0x30] sm:$0xff]  ;;  %v1674_v56 = vld [vmem:[#allocation6 + $0x28] sm:$0xff] }
  0x21   :  { %261 = vmatpush.msra.mxu2 %v1526_v8  ;;  %465 = vmatpush.msrb.mxu0 %v1630_v43  ;;  %v1679_v57 = vld [vmem:[#allocation8 + $0x28] sm:$0xff]  ;;  %v1681_v58 = vld [vmem:[#allocation6 + $0x20] sm:$0xff]  ;;  %v1687_v61 = vld [vmem:[#allocation6 + $0x18] sm:$0xff] }
  0x22   :  { %217 = vmatpush.msra.mxu1 %v1530_v9  ;;  %322 = vmatpush.msra.mxu3 %v1632_v44  ;;  %v1694_v63 = vld [vmem:[#allocation6 + $0x10] sm:$0xff]  ;;  %v1698_v4 = vld [vmem:[#allocation6 + $0x8] sm:$0xff]  ;;  %v1703_v19 = vld [vmem:[#allocation6] sm:$0xff] }
  0x23   :  { %262 = vmatpush.msra.mxu2 %v1530_v9  ;;  %466 = vmatpush.msrb.mxu0 %v1637_v45  ;;  %2194 = vst [vmem:[#allocation19_spill] sm:$0xff] %v1698_v4  ;;  %v1705_v20 = vld [vmem:[#allocation8 + $0x20] sm:$0xff]  ;;  %v103_v25 = vld [vmem:[%s2165_s0 + $0x8] sm:$0xff] }
  0x24   :  { %218 = vmatpush.msra.mxu1 %v1534_v10  ;;  %323 = vmatpush.msra.mxu3 %v1639_v46  ;;  %2195 = vst [vmem:[#allocation20_spill] sm:$0xff] %v1703_v19  ;;  %v1116_v24 = vld [vmem:[#allocation9 + $0x40] sm:$0xff] }
  0x25   :  { %263 = vmatpush.msra.mxu2 %v1534_v10  ;;  %467 = vmatpush.msrb.mxu0 %v1644_v47 }
  0x26   :  { %219 = vmatpush.msra.mxu1 %v1538_v11  ;;  %324 = vmatpush.msra.mxu3 %v1646_v48 }
  0x27   :  { %264 = vmatpush.msra.mxu2 %v1538_v11  ;;  %468 = vmatpush.msrb.mxu0 %v1651_v49 }
  0x28   :  { %220 = vmatpush.msra.mxu1 %v1542_v12  ;;  %325 = vmatpush.msra.mxu3 %v1653_v50 }
  0x29   :  { %265 = vmatpush.msra.mxu2 %v1542_v12  ;;  %469 = vmatpush.msrb.mxu0 %v1658_v51 }
  0x2a   :  { %221 = vmatpush.msra.mxu1 %v1546_v13  ;;  %326 = vmatpush.msra.mxu3 %v1660_v52 }
  0x2b   :  { %266 = vmatpush.msra.mxu2 %v1546_v13  ;;  %470 = vmatpush.msrb.mxu0 %v1665_v53 }
  0x2c   :  { %222 = vmatpush.msra.mxu1 %v1550_v14  ;;  %327 = vmatpush.msra.mxu3 %v1667_v54 }
  0x2d   :  { %267 = vmatpush.msra.mxu2 %v1550_v14  ;;  %471 = vmatpush.msrb.mxu0 %v1672_v55 }
  0x2e   :  { %223 = vmatpush.msra.mxu1 %v1554_v15  ;;  %328 = vmatpush.msra.mxu3 %v1674_v56 }
  0x2f   :  { %268 = vmatpush.msra.mxu2 %v1554_v15  ;;  %472 = vmatpush.msrb.mxu0 %v1679_v57 }
  0x30   :  { %224 = vmatpush.msra.mxu1 %v1558_v16  ;;  %329 = vmatpush.msra.mxu3 %v1681_v58 }
  0x31   :  { %269 = vmatpush.msra.mxu2 %v1558_v16  ;;  %473 = vmatpush.msrb.mxu0 %v1705_v20 }
  0x32   :  { %225 = vmatpush.msra.mxu1 %v1562_v17  ;;  %330 = vmatpush.msra.mxu3 %v1687_v61 }
  0x33   :  { %226 = vmatmul.f32.vlgmr.msra.gmra.mxu1 %v1431_v18  ;;  %270 = vmatpush.msra.mxu2 %v1562_v17 }
  0x34   :  { %354 = vmatpush.msrb.mxu1 %v1614_v38  ;;  %331 = vmatpush.msra.mxu3 %v1694_v63 }
  0x35   :  { %399 = vmatpush.msrb.mxu2 %v1498_v0  ;;  %1170 = vmatmul.msk.f32.gmra.mxu0 %vm115_vm1, %v103_v25 }
  0x36   :  { %355 = vmatpush.msrb.mxu1 %v1619_v40  ;;  %332 = vmatpush.msra.mxu3 %v1698_v4 }
  0x37   :  { %400 = vmatpush.msrb.mxu2 %v1500_v1 }
  0x38   :  { %356 = vmatpush.msrb.mxu1 %v1623_v41  ;;  %333 = vmatpush.msra.mxu3 %v1703_v19 }
  0x39   :  { %401 = vmatpush.msrb.mxu2 %v1504_v2 }
  0x3a   :  { %357 = vmatpush.msrb.mxu1 %v1630_v43  ;;  %442 = vmatpush.msrb.mxu3 %v1609_v36 }
  0x3b   :  { %402 = vmatpush.msrb.mxu2 %v1508_v3 }
  0x3c   :  { %358 = vmatpush.msrb.mxu1 %v1637_v45  ;;  %443 = vmatpush.msrb.mxu3 %v1611_v37 }
  0x3d   :  { %403 = vmatpush.msrb.mxu2 %v1517_v6 }
  0x3e   :  { %359 = vmatpush.msrb.mxu1 %v1644_v47  ;;  %444 = vmatpush.msrb.mxu3 %v1616_v39 }
  0x3f   :  { %404 = vmatpush.msrb.mxu2 %v1522_v7 }
  0x40   :  { %360 = vmatpush.msrb.mxu1 %v1651_v49  ;;  %445 = vmatpush.msrb.mxu3 %v1625_v42 }
  0x41   :  { %405 = vmatpush.msrb.mxu2 %v1526_v8 }
  0x42   :  { %361 = vmatpush.msrb.mxu1 %v1658_v51  ;;  %446 = vmatpush.msrb.mxu3 %v1632_v44 }
  0x43   :  { %406 = vmatpush.msrb.mxu2 %v1530_v9 }
  0x44   :  { %362 = vmatpush.msrb.mxu1 %v1665_v53  ;;  %447 = vmatpush.msrb.mxu3 %v1639_v46 }
  0x45   :  { %407 = vmatpush.msrb.mxu2 %v1534_v10 }
  0x46   :  { %363 = vmatpush.msrb.mxu1 %v1672_v55  ;;  %448 = vmatpush.msrb.mxu3 %v1646_v48 }
  0x47   :  { %408 = vmatpush.msrb.mxu2 %v1538_v11 }
  0x48   :  { %364 = vmatpush.msrb.mxu1 %v1679_v57  ;;  %449 = vmatpush.msrb.mxu3 %v1653_v50 }
  0x49   :  { %409 = vmatpush.msrb.mxu2 %v1542_v12 }
  0x4a   :  { %365 = vmatpush.msrb.mxu1 %v1705_v20  ;;  %450 = vmatpush.msrb.mxu3 %v1660_v52 }
  0x4b   :  { %410 = vmatpush.msrb.mxu2 %v1546_v13 }
  0x4c   :  { %451 = vmatpush.msrb.mxu3 %v1667_v54 }
  0x4d   :  { %411 = vmatpush.msrb.mxu2 %v1550_v14 }
  0x4e   :  { %452 = vmatpush.msrb.mxu3 %v1674_v56 }
  0x4f   :  { %412 = vmatpush.msrb.mxu2 %v1554_v15 }
  0x50   :  { %453 = vmatpush.msrb.mxu3 %v1681_v58 }
  0x51   :  { %413 = vmatpush.msrb.mxu2 %v1558_v16 }
  0x52   :  { %454 = vmatpush.msrb.mxu3 %v1687_v61 }
  0x53   :  { %414 = vmatpush.msrb.mxu2 %v1562_v17 }
  0x54   :  { %455 = vmatpush.msrb.mxu3 %v1694_v63 }
  0x56   :  { %456 = vmatpush.msrb.mxu3 %v1698_v4 }
  0x58   :  { %457 = vmatpush.msrb.mxu3 %v1703_v19 }
  0x95   :  { %v161_v22 = vpop.f32.mrf.mxu0 }
  0x96   :  { %v162_v23 = vadd.f32 %v1589_v21, %v161_v22  ;;  %v1709_v22 = vld [vmem:[#allocation8 + $0x18] sm:$0xff] }
  0x97   :  { %366 = vmatpush.msrb.mxu1 %v1709_v22  ;;  %474 = vmatpush.msrb.mxu0 %v1709_v22 }
  0xb0   :  { %v227_v27 = vpop.f32.mrf.mxu1 }
  0xb1   :  { %v230_v28 = vadd.f32 %v227_v27, %v162_v23  ;;  %v1711_v23 = vld [vmem:[#allocation8 + $0x10] sm:$0xff]  ;;  %v1720_v27 = vld [vmem:[#allocation8 + $0x8] sm:$0xff] }
  0xb2   :  { %2196 = vst [vmem:[#allocation21_spill] sm:$0xff] %v1720_v27  ;;  %367 = vmatpush.msrb.mxu1 %v1711_v23  ;;  %475 = vmatpush.msrb.mxu0 %v1711_v23 }
  0xb3   :  { %v231_v29 = vmul.f32 %v230_v28, %v1598_v26  ;;  %v1725_v28 = vld [vmem:[#allocation8] sm:$0xff] }
  0xb4   :  { %2197 = vst [vmem:[#allocation22_spill] sm:$0xff] %v1725_v28  ;;  %368 = vmatpush.msrb.mxu1 %v1720_v27  ;;  %476 = vmatpush.msrb.mxu0 %v1720_v27 }
  0xb5   :  { %1191 = vtanh.f32 %v231_v29 }
  0xb6   :  { %369 = vmatpush.msrb.mxu1 %v1725_v28  ;;  %477 = vmatpush.msrb.mxu0 %v1725_v28 }
  0xb7   :  { %370 = vmatmul.f32.vlgmr.msrb.gmra.mxu1 %v1431_v18 }
  0xb8   :  { %507 = vmatpush.msra.mxu1 %v1498_v0  ;;  %615 = vmatpush.msra.mxu0 %v1498_v0 }
  0xba   :  { %508 = vmatpush.msra.mxu1 %v1500_v1  ;;  %616 = vmatpush.msra.mxu0 %v1500_v1 }
  0xbb   :  { %v1192_v30 = vpop.eup %1191 }
  0xbc   :  { %v233_v31 = vadd.f32 1.0, %v1192_v30  ;;  %509 = vmatpush.msra.mxu1 %v1504_v2  ;;  %617 = vmatpush.msra.mxu0 %v1504_v2 }
  0xbe   :  { %v234_v32 = vmul.f32 0.5, %v233_v31  ;;  %510 = vmatpush.msra.mxu1 %v1508_v3  ;;  %618 = vmatpush.msra.mxu0 %v1508_v3 }
  0xc0   :  { %v1603_v33 = vsel %vm1592_vm4, %v1192_v30, %v234_v32  ;;  %511 = vmatpush.msra.mxu1 %v1517_v6  ;;  %619 = vmatpush.msra.mxu0 %v1517_v6  ;;  %v164_v30 = vpop.f32.mrf.mxu0  ;;  %v1832_v32 = vld [vmem:[%s2171_s6] ss:$0 sm:$0xff] }
  0xc1   :  { %237 = vrot.lane.b32.xlu0 %v1603_v33, %s1433_s11  ;;  %v241_v59 = vmul.f32 0.0, %v1603_v33  ;;  %v165_v31 = vadd.f32 %v1589_v21, %v164_v30 }
  0xc2   :  { %512 = vmatpush.msra.mxu1 %v1522_v7  ;;  %620 = vmatpush.msra.mxu0 %v1522_v7 }
  0xc4   :  { %513 = vmatpush.msra.mxu1 %v1526_v8  ;;  %621 = vmatpush.msra.mxu0 %v1526_v8 }
  0xc6   :  { %514 = vmatpush.msra.mxu1 %v1530_v9  ;;  %622 = vmatpush.msra.mxu0 %v1530_v9 }
  0xc8   :  { %515 = vmatpush.msra.mxu1 %v1534_v10  ;;  %623 = vmatpush.msra.mxu0 %v1534_v10 }
  0xca   :  { %516 = vmatpush.msra.mxu1 %v1538_v11  ;;  %624 = vmatpush.msra.mxu0 %v1538_v11 }
  0xcc   :  { %517 = vmatpush.msra.mxu1 %v1542_v12  ;;  %625 = vmatpush.msra.mxu0 %v1542_v12 }
  0xce   :  { %518 = vmatpush.msra.mxu1 %v1546_v13  ;;  %626 = vmatpush.msra.mxu0 %v1546_v13 }
  0xd0   :  { %519 = vmatpush.msra.mxu1 %v1550_v14  ;;  %627 = vmatpush.msra.mxu0 %v1550_v14 }
  0xd2   :  { %520 = vmatpush.msra.mxu1 %v1554_v15  ;;  %628 = vmatpush.msra.mxu0 %v1554_v15 }
  0xd4   :  { %521 = vmatpush.msra.mxu1 %v1558_v16  ;;  %629 = vmatpush.msra.mxu0 %v1558_v16 }
  0xd6   :  { %522 = vmatpush.msra.mxu1 %v1562_v17  ;;  %630 = vmatpush.msra.mxu0 %v1562_v17 }
  0xd8   :  { %658 = vmatpush.msrb.mxu1 %v1609_v36 }
  0xda   :  { %659 = vmatpush.msrb.mxu1 %v1611_v37 }
  0xdc   :  { %660 = vmatpush.msrb.mxu1 %v1616_v39 }
  0xde   :  { %661 = vmatpush.msrb.mxu1 %v1625_v42 }
  0xe0   :  { %662 = vmatpush.msrb.mxu1 %v1632_v44 }
  0xe2   :  { %663 = vmatpush.msrb.mxu1 %v1639_v46 }
  0xe4   :  { %664 = vmatpush.msrb.mxu1 %v1646_v48 }
  0xe6   :  { %665 = vmatpush.msrb.mxu1 %v1653_v50 }
  0xe8   :  { %666 = vmatpush.msrb.mxu1 %v1660_v52 }
  0xea   :  { %667 = vmatpush.msrb.mxu1 %v1667_v54 }
  0xec   :  { %668 = vmatpush.msrb.mxu1 %v1674_v56 }
  0xee   :  { %669 = vmatpush.msrb.mxu1 %v1681_v58 }
  0xf0   :  { %670 = vmatpush.msrb.mxu1 %v1687_v61 }
  0xf2   :  { %671 = vmatpush.msrb.mxu1 %v1694_v63 }
  0xf4   :  { %672 = vmatpush.msrb.mxu1 %v1698_v4 }
  0xf6   :  { %673 = vmatpush.msrb.mxu1 %v1703_v19 }
 0x133   :  { %v238_v34 = vpop.permute.xlu0 %237 }
 0x134   :  { %v240_v35 = vmul.f32 %v238_v34, %v1603_v33 }
 0x136   :  { %243 = vrot.lane.b32.xlu0 %v240_v35, %s1434_s12 }
 0x1a8   :  { %v244_v60 = vpop.permute.xlu0 %243 }
 0x1a9   :  { %v1691_v62 = vadd.f32 %v244_v60, %v241_v59 }
 0x1ab   :  { %1193 = vtanh.f32 %v1691_v62 }
 0x1b1   :  { %v1194_v5 = vpop.eup %1193 }
 0x1b2   :  { %249 = vrot.lane.b32.xlu1 %v1194_v5, %s1433_s11 }
 0x224   :  { %v250_v18 = vpop.permute.xlu1 %249 }
 0x225   :  { %v252_v29 = vmul.f32 %v250_v18, %v1603_v33  ;;  %v371_v33 = vpop.f32.mrf.mxu1 }
 0x227   :  { %271 = vmatmul.f32.vlgmr.msra.gmra.mxu2 %v252_v29  ;;  %334 = vmatmul.f32.vlgmr.msra.gmra.mxu3 %v252_v29 }
 0x228   :  { %550 = vmatpush.msra.mxu2 %v1609_v36  ;;  %570 = vmatpush.msra.mxu3 %v1614_v38 }
 0x22a   :  { %551 = vmatpush.msra.mxu2 %v1611_v37  ;;  %571 = vmatpush.msra.mxu3 %v1619_v40 }
 0x22c   :  { %552 = vmatpush.msra.mxu2 %v1616_v39  ;;  %572 = vmatpush.msra.mxu3 %v1623_v41 }
 0x22e   :  { %553 = vmatpush.msra.mxu2 %v1625_v42  ;;  %573 = vmatpush.msra.mxu3 %v1630_v43 }
 0x230   :  { %554 = vmatpush.msra.mxu2 %v1632_v44  ;;  %574 = vmatpush.msra.mxu3 %v1637_v45 }
 0x232   :  { %555 = vmatpush.msra.mxu2 %v1639_v46  ;;  %575 = vmatpush.msra.mxu3 %v1644_v47 }
 0x234   :  { %556 = vmatpush.msra.mxu2 %v1646_v48  ;;  %576 = vmatpush.msra.mxu3 %v1651_v49 }
 0x236   :  { %557 = vmatpush.msra.mxu2 %v1653_v50  ;;  %577 = vmatpush.msra.mxu3 %v1658_v51 }
 0x238   :  { %558 = vmatpush.msra.mxu2 %v1660_v52  ;;  %578 = vmatpush.msra.mxu3 %v1665_v53 }
 0x23a   :  { %559 = vmatpush.msra.mxu2 %v1667_v54  ;;  %579 = vmatpush.msra.mxu3 %v1672_v55 }
 0x23c   :  { %560 = vmatpush.msra.mxu2 %v1674_v56  ;;  %580 = vmatpush.msra.mxu3 %v1679_v57 }
 0x23e   :  { %561 = vmatpush.msra.mxu2 %v1681_v58  ;;  %581 = vmatpush.msra.mxu3 %v1705_v20 }
 0x240   :  { %562 = vmatpush.msra.mxu2 %v1687_v61  ;;  %582 = vmatpush.msra.mxu3 %v1709_v22 }
 0x242   :  { %563 = vmatpush.msra.mxu2 %v1694_v63  ;;  %583 = vmatpush.msra.mxu3 %v1711_v23 }
 0x244   :  { %564 = vmatpush.msra.mxu2 %v1698_v4  ;;  %584 = vmatpush.msra.mxu3 %v1720_v27 }
 0x246   :  { %565 = vmatpush.msra.mxu2 %v1703_v19  ;;  %585 = vmatpush.msra.mxu3 %v1725_v28 }
 0x2aa   :  { %v272_v34 = vpop.f32.mrf.mxu2  ;;  %v335_v35 = vpop.f32.mrf.mxu3 }
 0x2ab   :  { %v275_v59 = vadd.f32 %v272_v34, %v165_v31  ;;  %v336_v60 = vadd.f32 %v1832_v32, %v335_v35 }
 0x2ad   :  { %v276_v5 = vmul.f32 %v275_v59, %v1598_v26  ;;  %v374_v25 = vadd.f32 %v371_v33, %v336_v60 }
 0x2af   :  { %1195 = vtanh.f32 %v276_v5  ;;  %v375_v18 = vmul.f32 %v374_v25, %v1598_v26 }
 0x2b1   :  { %1197 = vtanh.f32 %v375_v18 }
 0x2b5   :  { %v1196_v29 = vpop.eup %1195 }
 0x2b6   :  { %v278_v30 = vadd.f32 1.0, %v1196_v29 }
 0x2b7   :  { %v1198_v21 = vpop.eup %1197 }
 0x2b8   :  { %v279_v17 = vmul.f32 0.5, %v278_v30  ;;  %v377_v28 = vadd.f32 1.0, %v1198_v21 }
 0x2ba   :  { %v280_v16 = vsel %vm1592_vm4, %v1196_v29, %v279_v17  ;;  %v378_v27 = vmul.f32 0.5, %v377_v28  ;;  %v104_v17 = vld [vmem:[%s2165_s0 + $0x10] sm:$0xff]  ;;  %v107_v29 = vld [vmem:[%s2165_s0 + $0x28] sm:$0xff] }
 0x2bb   :  { %282 = vrot.lane.b32.xlu1 %v280_v16, %s1433_s11  ;;  %1171 = vmatmul.msk.f32.gmra.mxu0 %vm115_vm1, %v104_v17  ;;  %v286_v28 = vmul.f32 %v280_v16, %v1691_v62  ;;  %v108_v62 = vld [vmem:[%s2165_s0 + $0x30] sm:$0xff] }
 0x2bc   :  { %v379_v31 = vsel %vm1592_vm4, %v1198_v21, %v378_v27  ;;  %v105_v21 = vld [vmem:[%s2165_s0 + $0x18] sm:$0xff]  ;;  %v106_v27 = vld [vmem:[%s2165_s0 + $0x20] sm:$0xff] }
 0x2bd   :  { %381 = vrot.lane.b32.xlu2 %v379_v31, %s1433_s11  ;;  %v385_v25 = vmul.f32 0.0, %v379_v31 }
 0x2c3   :  { %1172 = vmatmul.msk.f32.gmra.mxu0 %vm115_vm1, %v105_v21 }
 0x2cb   :  { %1173 = vmatmul.msk.f32.gmra.mxu0 %vm115_vm1, %v106_v27  ;;  %v2199_v27 = vld [vmem:[#allocation16_spill] sm:$0xff] }
 0x2d3   :  { %1174 = vmatmul.msk.f32.gmra.mxu0 %vm115_vm1, %v107_v29 }
 0x2db   :  { %1175 = vmatmul.msk.f32.gmra.mxu0 %vm115_vm1, %v108_v62 }
 0x317   :  { %v382_v33 = vpop.permute.xlu2 %381 }
 0x318   :  { %v384_v34 = vmul.f32 %v382_v33, %v379_v31 }
 0x31a   :  { %387 = vrot.lane.b32.xlu0 %v384_v34, %s1434_s12 }
 0x32d   :  { %v283_v35 = vpop.permute.xlu1 %282 }
 0x32e   :  { %v285_v59 = vmul.f32 %v283_v35, %v280_v16  ;;  %v109_v35 = vld [vmem:[%s2165_s0 + $0x38] sm:$0xff] }
 0x32f   :  { %1176 = vmatmul.msk.f32.gmra.mxu0 %vm115_vm1, %v109_v35  ;;  %v2207_v35 = vld [vmem:[#allocation18_spill] sm:$0xff] }
 0x330   :  { %288 = vrot.lane.b32.xlu2 %v285_v59, %s1434_s12 }
 0x38a   :  { %v289_v60 = vpop.permute.xlu2 %288 }
 0x38b   :  { %v1858_v5 = vadd.f32 %v289_v60, %v286_v28  ;;  %v2200_v28 = vld [vmem:[#allocation22_spill] sm:$0xff]  ;;  %v2201_v60 = vld [vmem:[#allocation17_spill] sm:$0xff] }
 0x38c   :  { %v388_v18 = vpop.permute.xlu0 %387 }
 0x38d   :  { %1199 = vtanh.f32 %v1858_v5  ;;  %v1864_v30 = vadd.f32 %v388_v18, %v385_v25  ;;  %v167_v25 = vpop.f32.mrf.mxu0 }
 0x38f   :  { %1201 = vtanh.f32 %v1864_v30 }
 0x393   :  { %v1200_v33 = vpop.eup %1199 }
 0x394   :  { %294 = vrot.lane.b32.xlu1 %v1200_v33, %s1433_s11 }
 0x395   :  { %v1202_v34 = vpop.eup %1201  ;;  %v1926_v18 = vpop.f32.mrf.mxu0 }
 0x396   :  { %393 = vrot.lane.b32.xlu2 %v1202_v34, %s1433_s11 }
 0x39d   :  { %v1928_v29 = vpop.f32.mrf.mxu0 }
 0x39e   :  { %2203 = vst [vmem:[#allocation23_spill] sm:$0xff] %v1928_v29 }
 0x3a5   :  { %v1930_v33 = vpop.f32.mrf.mxu0 }
 0x3a6   :  { %2204 = vst [vmem:[#allocation24_spill] sm:$0xff] %v1930_v33 }
 0x3ad   :  { %v1932_v62 = vpop.f32.mrf.mxu0 }
 0x3ae   :  { %2205 = vst [vmem:[#allocation25_spill] sm:$0xff] %v1932_v62 }
 0x3b5   :  { %v1934_v34 = vpop.f32.mrf.mxu0 }
 0x3b6   :  { %2206 = vst [vmem:[#allocation26_spill] sm:$0xff] %v1934_v34 }
 0x3f0   :  { %v394_v59 = vpop.permute.xlu2 %393 }
 0x3f1   :  { %v396_v17 = vmul.f32 %v394_v59, %v379_v31  ;;  %v168_v59 = vadd.f32 %v2207_v35, %v167_v25 }
 0x3f3   :  { %478 = vmatmul.f32.vlgmr.msrb.gmra.mxu0 %v396_v17 }
 0x3f4   :  { %766 = vmatpush.msrb.mxu0 %v1609_v36 }
 0x3f6   :  { %767 = vmatpush.msrb.mxu0 %v1611_v37 }
 0x3f8   :  { %768 = vmatpush.msrb.mxu0 %v1616_v39 }
 0x3fa   :  { %769 = vmatpush.msrb.mxu0 %v1625_v42 }
 0x3fc   :  { %770 = vmatpush.msrb.mxu0 %v1632_v44 }
 0x3fe   :  { %771 = vmatpush.msrb.mxu0 %v1639_v46 }
 0x400   :  { %772 = vmatpush.msrb.mxu0 %v1646_v48 }
 0x402   :  { %773 = vmatpush.msrb.mxu0 %v1653_v50 }
 0x404   :  { %774 = vmatpush.msrb.mxu0 %v1660_v52 }
 0x406   :  { %v295_v31 = vpop.permute.xlu1 %294  ;;  %775 = vmatpush.msrb.mxu0 %v1667_v54 }
 0x407   :  { %v297_v21 = vmul.f32 %v295_v31, %v280_v16  ;;  %v2198_v16 = vld [vmem:[#allocation21_spill] sm:$0xff] }
 0x408   :  { %776 = vmatpush.msrb.mxu0 %v1674_v56  ;;  %2202 = vst [vmem:[#allocation21_spill] sm:$0xff] %v1926_v18 }
 0x409   :  { %415 = vmatmul.f32.vlgmr.msrb.gmra.mxu2 %v297_v21  ;;  %458 = vmatmul.f32.vlgmr.msrb.gmra.mxu3 %v297_v21 }
 0x40a   :  { %678 = vmatpush.msrb.mxu2 %v1614_v38  ;;  %723 = vmatpush.msrb.mxu3 %v1498_v0 }
 0x40b   :  { %777 = vmatpush.msrb.mxu0 %v1681_v58 }
 0x40c   :  { %679 = vmatpush.msrb.mxu2 %v1619_v40  ;;  %724 = vmatpush.msrb.mxu3 %v1500_v1 }
 0x40d   :  { %778 = vmatpush.msrb.mxu0 %v1687_v61 }
 0x40e   :  { %680 = vmatpush.msrb.mxu2 %v1623_v41  ;;  %725 = vmatpush.msrb.mxu3 %v1504_v2 }
 0x40f   :  { %779 = vmatpush.msrb.mxu0 %v1694_v63 }
 0x410   :  { %681 = vmatpush.msrb.mxu2 %v1630_v43  ;;  %726 = vmatpush.msrb.mxu3 %v1508_v3 }
 0x411   :  { %780 = vmatpush.msrb.mxu0 %v1698_v4 }
 0x412   :  { %682 = vmatpush.msrb.mxu2 %v1637_v45  ;;  %727 = vmatpush.msrb.mxu3 %v1517_v6 }
 0x413   :  { %781 = vmatpush.msrb.mxu0 %v1703_v19 }
 0x414   :  { %683 = vmatpush.msrb.mxu2 %v1644_v47  ;;  %728 = vmatpush.msrb.mxu3 %v1522_v7 }
 0x416   :  { %684 = vmatpush.msrb.mxu2 %v1651_v49  ;;  %729 = vmatpush.msrb.mxu3 %v1526_v8 }
 0x418   :  { %685 = vmatpush.msrb.mxu2 %v1658_v51  ;;  %730 = vmatpush.msrb.mxu3 %v1530_v9 }
 0x41a   :  { %686 = vmatpush.msrb.mxu2 %v1665_v53  ;;  %731 = vmatpush.msrb.mxu3 %v1534_v10 }
 0x41c   :  { %687 = vmatpush.msrb.mxu2 %v1672_v55  ;;  %732 = vmatpush.msrb.mxu3 %v1538_v11 }
 0x41e   :  { %688 = vmatpush.msrb.mxu2 %v1679_v57  ;;  %733 = vmatpush.msrb.mxu3 %v1542_v12 }
 0x420   :  { %689 = vmatpush.msrb.mxu2 %v1705_v20  ;;  %734 = vmatpush.msrb.mxu3 %v1546_v13 }
 0x422   :  { %690 = vmatpush.msrb.mxu2 %v1709_v22  ;;  %735 = vmatpush.msrb.mxu3 %v1550_v14 }
 0x424   :  { %691 = vmatpush.msrb.mxu2 %v1711_v23  ;;  %736 = vmatpush.msrb.mxu3 %v1554_v15 }
 0x426   :  { %692 = vmatpush.msrb.mxu2 %v2198_v16  ;;  %737 = vmatpush.msrb.mxu3 %v2199_v27 }
 0x428   :  { %693 = vmatpush.msrb.mxu2 %v2200_v28  ;;  %738 = vmatpush.msrb.mxu3 %v2201_v60 }
 0x470   :  { %v479_v4 = vpop.f32.mrf.mxu0 }
 0x48c   :  { %v416_v17 = vpop.f32.mrf.mxu2  ;;  %v459_v31 = vpop.f32.mrf.mxu3 }
 0x48d   :  { %v419_v21 = vadd.f32 %v416_v17, %v168_v59  ;;  %v460_v19 = vadd.f32 %v1832_v32, %v459_v31 }
 0x48f   :  { %v420_v60 = vmul.f32 %v419_v21, %v1598_v26  ;;  %v482_v28 = vadd.f32 %v479_v4, %v460_v19 }
 0x491   :  { %1203 = vtanh.f32 %v420_v60  ;;  %v483_v29 = vmul.f32 %v482_v28, %v1598_v26 }
 0x493   :  { %1205 = vtanh.f32 %v483_v29 }
 0x497   :  { %v1204_v33 = vpop.eup %1203 }
 0x498   :  { %v422_v18 = vadd.f32 1.0, %v1204_v33 }
 0x499   :  { %v1206_v62 = vpop.eup %1205 }
 0x49a   :  { %v423_v27 = vmul.f32 0.5, %v422_v18  ;;  %v485_v34 = vadd.f32 1.0, %v1206_v62 }
 0x49c   :  { %v424_v25 = vsel %vm1592_vm4, %v1204_v33, %v423_v27  ;;  %v486_v35 = vmul.f32 0.5, %v485_v34 }
 0x49d   :  { %426 = vrot.lane.b32.xlu0 %v424_v25, %s1433_s11  ;;  %v430_v18 = vmul.f32 %v424_v25, %v1858_v5 }
 0x49e   :  { %v487_v59 = vsel %vm1592_vm4, %v1206_v62, %v486_v35 }
 0x49f   :  { %489 = vrot.lane.b32.xlu1 %v487_v59, %s1433_s11  ;;  %v493_v62 = vmul.f32 %v487_v59, %v1864_v30 }
 0x50f   :  { %v427_v4 = vpop.permute.xlu0 %426 }
 0x510   :  { %v429_v19 = vmul.f32 %v427_v4, %v424_v25 }
 0x511   :  { %v490_v28 = vpop.permute.xlu1 %489 }
 0x512   :  { %v492_v60 = vmul.f32 %v490_v28, %v487_v59  ;;  %432 = vrot.lane.b32.xlu2 %v429_v19, %s1434_s12 }
 0x514   :  { %495 = vrot.lane.b32.xlu0 %v492_v60, %s1434_s12 }
 0x56c   :  { %v433_v29 = vpop.permute.xlu2 %432 }
 0x56d   :  { %v1949_v27 = vadd.f32 %v433_v29, %v430_v18 }
 0x56f   :  { %1207 = vtanh.f32 %v1949_v27 }
 0x575   :  { %v1208_v33 = vpop.eup %1207 }
 0x576   :  { %438 = vrot.lane.b32.xlu1 %v1208_v33, %s1433_s11 }
 0x586   :  { %v496_v34 = vpop.permute.xlu0 %495 }
 0x587   :  { %v1954_v35 = vadd.f32 %v496_v34, %v493_v62 }
 0x589   :  { %1209 = vtanh.f32 %v1954_v35 }
 0x58f   :  { %v1210_v17 = vpop.eup %1209 }
 0x590   :  { %501 = vrot.lane.b32.xlu2 %v1210_v17, %s1433_s11 }
 0x5e8   :  { %v439_v31 = vpop.permute.xlu1 %438 }
 0x5e9   :  { %v441_v5 = vmul.f32 %v439_v31, %v424_v25 }
 0x5ea   :  { %v502_v21 = vpop.permute.xlu2 %501 }
 0x5eb   :  { %v504_v4 = vmul.f32 %v502_v21, %v487_v59  ;;  %523 = vmatmul.f32.vlgmr.msra.gmra.mxu1 %v441_v5  ;;  %566 = vmatmul.f32.vlgmr.msra.gmra.mxu2 %v441_v5 }
 0x5ec   :  { %786 = vmatpush.msra.mxu1 %v1614_v38  ;;  %831 = vmatpush.msra.mxu2 %v1498_v0  ;;  %v2208_v0 = vld [vmem:[#allocation16_spill] sm:$0xff] }
 0x5ed   :  { %586 = vmatmul.f32.vlgmr.msra.gmra.mxu3 %v504_v4 }
 0x5ee   :  { %787 = vmatpush.msra.mxu1 %v1619_v40  ;;  %874 = vmatpush.msra.mxu3 %v1609_v36 }
 0x5ef   :  { %832 = vmatpush.msra.mxu2 %v1500_v1  ;;  %v2209_v1 = vld [vmem:[#allocation22_spill] sm:$0xff] }
 0x5f0   :  { %788 = vmatpush.msra.mxu1 %v1623_v41  ;;  %875 = vmatpush.msra.mxu3 %v1611_v37 }
 0x5f1   :  { %833 = vmatpush.msra.mxu2 %v1504_v2  ;;  %v2210_v2 = vld [vmem:[#allocation19_spill] sm:$0xff] }
 0x5f2   :  { %789 = vmatpush.msra.mxu1 %v1630_v43  ;;  %876 = vmatpush.msra.mxu3 %v1616_v39 }
 0x5f3   :  { %834 = vmatpush.msra.mxu2 %v1508_v3  ;;  %v2211_v3 = vld [vmem:[#allocation17_spill] sm:$0xff] }
 0x5f4   :  { %790 = vmatpush.msra.mxu1 %v1637_v45  ;;  %877 = vmatpush.msra.mxu3 %v1625_v42 }
 0x5f5   :  { %835 = vmatpush.msra.mxu2 %v1517_v6  ;;  %v2212_v6 = vld [vmem:[#allocation20_spill] sm:$0xff] }
 0x5f6   :  { %791 = vmatpush.msra.mxu1 %v1644_v47  ;;  %878 = vmatpush.msra.mxu3 %v1632_v44 }
 0x5f7   :  { %836 = vmatpush.msra.mxu2 %v1522_v7  ;;  %v2213_v7 = vld [vmem:[#allocation21_spill] sm:$0xff] }
 0x5f8   :  { %792 = vmatpush.msra.mxu1 %v1651_v49  ;;  %879 = vmatpush.msra.mxu3 %v1639_v46 }
 0x5f9   :  { %837 = vmatpush.msra.mxu2 %v1526_v8  ;;  %v2214_v8 = vld [vmem:[#allocation18_spill] sm:$0xff] }
 0x5fa   :  { %793 = vmatpush.msra.mxu1 %v1658_v51  ;;  %880 = vmatpush.msra.mxu3 %v1646_v48 }
 0x5fb   :  { %838 = vmatpush.msra.mxu2 %v1530_v9  ;;  %v171_v9 = vadd.f32 %v2214_v8, %v2213_v7 }
 0x5fc   :  { %794 = vmatpush.msra.mxu1 %v1665_v53  ;;  %881 = vmatpush.msra.mxu3 %v1653_v50 }
 0x5fd   :  { %839 = vmatpush.msra.mxu2 %v1534_v10 }
 0x5fe   :  { %795 = vmatpush.msra.mxu1 %v1672_v55  ;;  %882 = vmatpush.msra.mxu3 %v1660_v52 }
 0x5ff   :  { %840 = vmatpush.msra.mxu2 %v1538_v11 }
 0x600   :  { %796 = vmatpush.msra.mxu1 %v1679_v57  ;;  %883 = vmatpush.msra.mxu3 %v1667_v54 }
 0x601   :  { %841 = vmatpush.msra.mxu2 %v1542_v12 }
 0x602   :  { %797 = vmatpush.msra.mxu1 %v1705_v20  ;;  %884 = vmatpush.msra.mxu3 %v1674_v56 }
 0x603   :  { %842 = vmatpush.msra.mxu2 %v1546_v13 }
 0x604   :  { %798 = vmatpush.msra.mxu1 %v1709_v22  ;;  %885 = vmatpush.msra.mxu3 %v1681_v58 }
 0x605   :  { %843 = vmatpush.msra.mxu2 %v1550_v14 }
 0x606   :  { %799 = vmatpush.msra.mxu1 %v1711_v23  ;;  %886 = vmatpush.msra.mxu3 %v1687_v61 }
 0x607   :  { %844 = vmatpush.msra.mxu2 %v1554_v15 }
 0x608   :  { %800 = vmatpush.msra.mxu1 %v2198_v16  ;;  %887 = vmatpush.msra.mxu3 %v1694_v63 }
 0x609   :  { %845 = vmatpush.msra.mxu2 %v2208_v0 }
 0x60a   :  { %801 = vmatpush.msra.mxu1 %v2209_v1  ;;  %888 = vmatpush.msra.mxu3 %v2210_v2 }
 0x60b   :  { %846 = vmatpush.msra.mxu2 %v2211_v3 }
 0x60c   :  { %889 = vmatpush.msra.mxu3 %v2212_v6 }
 0x668   :  { %v524_v10 = vpop.f32.mrf.mxu1 }
 0x669   :  { %v527_v11 = vadd.f32 %v524_v10, %v171_v9 }
 0x66b   :  { %v528_v12 = vmul.f32 %v527_v11, %v1598_v26 }
 0x66d   :  { %1211 = vtanh.f32 %v528_v12  ;;  %v1255_v12 = vld [vmem:[#allocation3 + $0x78] sm:$0xff] }
 0x66e   :  { %v567_v13 = vpop.f32.mrf.mxu2 }
 0x66f   :  { %v568_v14 = vadd.f32 %v1832_v32, %v567_v13  ;;  %v1256_v13 = vld [vmem:[#allocation3 + $0x70] sm:$0xff] }
 0x670   :  { %v587_v15 = vpop.f32.mrf.mxu3 }
 0x671   :  { %v590_v30 = vadd.f32 %v587_v15, %v568_v14  ;;  %v1257_v14 = vld [vmem:[#allocation3 + $0x68] sm:$0xff] }
 0x673   :  { %v1212_v25 = vpop.eup %1211  ;;  %v591_v59 = vmul.f32 %v590_v30, %v1598_v26  ;;  %v1258_v30 = vld [vmem:[#allocation3 + $0x60] sm:$0xff] }
 0x674   :  { %v530_v19 = vadd.f32 1.0, %v1212_v25 }
 0x675   :  { %1213 = vtanh.f32 %v591_v59 }
 0x676   :  { %v531_v28 = vmul.f32 0.5, %v530_v19 }
 0x678   :  { %v532_v60 = vsel %vm1592_vm4, %v1212_v25, %v531_v28 }
 0x679   :  { %534 = vrot.lane.b32.xlu0 %v532_v60, %s1433_s11  ;;  %v538_v21 = vmul.f32 %v532_v60, %v1949_v27 }
 0x67b   :  { %v1214_v18 = vpop.eup %1213 }
 0x67c   :  { %v593_v29 = vadd.f32 1.0, %v1214_v18 }
 0x67e   :  { %v594_v33 = vmul.f32 0.5, %v593_v29 }
 0x680   :  { %v595_v62 = vsel %vm1592_vm4, %v1214_v18, %v594_v33 }
 0x681   :  { %597 = vrot.lane.b32.xlu1 %v595_v62, %s1433_s11  ;;  %v601_v7 = vmul.f32 %v595_v62, %v1954_v35 }
 0x6eb   :  { %v535_v34 = vpop.permute.xlu0 %534 }
 0x6ec   :  { %v537_v17 = vmul.f32 %v535_v34, %v532_v60 }
 0x6ee   :  { %540 = vrot.lane.b32.xlu2 %v537_v17, %s1434_s12 }
 0x6f3   :  { %v598_v31 = vpop.permute.xlu1 %597 }
 0x6f4   :  { %v600_v5 = vmul.f32 %v598_v31, %v595_v62 }
 0x6f6   :  { %603 = vrot.lane.b32.xlu0 %v600_v5, %s1434_s12 }
 0x748   :  { %v541_v4 = vpop.permute.xlu2 %540 }
 0x749   :  { %v2020_v0 = vadd.f32 %v541_v4, %v538_v21 }
 0x74b   :  { %1215 = vtanh.f32 %v2020_v0 }
 0x751   :  { %v1216_v3 = vpop.eup %1215 }
 0x752   :  { %546 = vrot.lane.b32.xlu1 %v1216_v3, %s1433_s11 }
 0x768   :  { %v604_v8 = vpop.permute.xlu0 %603 }
 0x769   :  { %v2025_v9 = vadd.f32 %v604_v8, %v601_v7 }
 0x76b   :  { %1217 = vtanh.f32 %v2025_v9 }
 0x771   :  { %v1218_v10 = vpop.eup %1217 }
 0x772   :  { %609 = vrot.lane.b32.xlu2 %v1218_v10, %s1433_s11 }
 0x7c4   :  { %v547_v11 = vpop.permute.xlu1 %546 }
 0x7c5   :  { %v549_v27 = vmul.f32 %v547_v11, %v532_v60 }
 0x7c7   :  { %631 = vmatmul.f32.vlgmr.msra.gmra.mxu0 %v549_v27  ;;  %674 = vmatmul.f32.vlgmr.msrb.gmra.mxu1 %v549_v27 }
 0x7c8   :  { %894 = vmatpush.msra.mxu0 %v1614_v38  ;;  %939 = vmatpush.msrb.mxu1 %v1255_v12  ;;  %v1259_v38 = vld [vmem:[#allocation3 + $0x58] sm:$0xff] }
 0x7c9   :  { %v1272_v12 = vld [vmem:[#allocation8 + $0x78] sm:$0xff] }
 0x7ca   :  { %895 = vmatpush.msra.mxu0 %v1619_v40  ;;  %940 = vmatpush.msrb.mxu1 %v1256_v13  ;;  %v1260_v40 = vld [vmem:[#allocation3 + $0x50] sm:$0xff]  ;;  %v1273_v13 = vld [vmem:[#allocation6 + $0x78] sm:$0xff] }
 0x7cc   :  { %v610_v35 = vpop.permute.xlu2 %609  ;;  %896 = vmatpush.msra.mxu0 %v1623_v41  ;;  %941 = vmatpush.msrb.mxu1 %v1257_v14  ;;  %v1261_v41 = vld [vmem:[#allocation3 + $0x48] sm:$0xff]  ;;  %v1275_v14 = vld [vmem:[#allocation6 + $0x70] sm:$0xff] }
 0x7cd   :  { %v612_v15 = vmul.f32 %v610_v35, %v595_v62  ;;  %v1274_v35 = vld [vmem:[#allocation8 + $0x70] sm:$0xff] }
 0x7ce   :  { %897 = vmatpush.msra.mxu0 %v1630_v43  ;;  %942 = vmatpush.msrb.mxu1 %v1258_v30  ;;  %v1262_v43 = vld [vmem:[#allocation3 + $0x40] sm:$0xff] }
 0x7cf   :  { %694 = vmatmul.f32.vlgmr.msrb.gmra.mxu2 %v612_v15  ;;  %v1277_v15 = vld [vmem:[#allocation6 + $0x68] sm:$0xff]  ;;  %v1278_v30 = vld [vmem:[#allocation8 + $0x60] sm:$0xff] }
 0x7d0   :  { %898 = vmatpush.msra.mxu0 %v1637_v45  ;;  %982 = vmatpush.msrb.mxu2 %v1609_v36  ;;  %v1263_v36 = vld [vmem:[#allocation3 + $0x38] sm:$0xff]  ;;  %v1268_v45 = vld [vmem:[#allocation3 + $0x10] sm:$0xff] }
 0x7d1   :  { %943 = vmatpush.msrb.mxu1 %v1259_v38  ;;  %v1279_v38 = vld [vmem:[#allocation6 + $0x60] sm:$0xff] }
 0x7d2   :  { %899 = vmatpush.msra.mxu0 %v1644_v47  ;;  %983 = vmatpush.msrb.mxu2 %v1611_v37  ;;  %v1264_v37 = vld [vmem:[#allocation3 + $0x30] sm:$0xff]  ;;  %v1270_v47 = vld [vmem:[#allocation3] sm:$0xff] }
 0x7d3   :  { %944 = vmatpush.msrb.mxu1 %v1260_v40  ;;  %v1280_v40 = vld [vmem:[#allocation8 + $0x58] sm:$0xff] }
 0x7d4   :  { %900 = vmatpush.msra.mxu0 %v1651_v49  ;;  %984 = vmatpush.msrb.mxu2 %v1616_v39  ;;  %v1265_v39 = vld [vmem:[#allocation3 + $0x28] sm:$0xff]  ;;  %v2215_v49 = vld [vmem:[#allocation23_spill] sm:$0xff] }
 0x7d5   :  { %945 = vmatpush.msrb.mxu1 %v1261_v41  ;;  %v1281_v41 = vld [vmem:[#allocation6 + $0x58] sm:$0xff] }
 0x7d6   :  { %901 = vmatpush.msra.mxu0 %v1658_v51  ;;  %985 = vmatpush.msrb.mxu2 %v1625_v42  ;;  %v1266_v42 = vld [vmem:[#allocation3 + $0x20] sm:$0xff] }
 0x7d7   :  { %946 = vmatpush.msrb.mxu1 %v1262_v43 }
 0x7d8   :  { %902 = vmatpush.msra.mxu0 %v1665_v53  ;;  %986 = vmatpush.msrb.mxu2 %v1632_v44  ;;  %v1267_v44 = vld [vmem:[#allocation3 + $0x18] sm:$0xff] }
 0x7d9   :  { %947 = vmatpush.msrb.mxu1 %v1263_v36  ;;  %v1282_v36 = vld [vmem:[#allocation8 + $0x50] sm:$0xff] }
 0x7da   :  { %903 = vmatpush.msra.mxu0 %v1672_v55  ;;  %987 = vmatpush.msrb.mxu2 %v1639_v46  ;;  %v1269_v46 = vld [vmem:[#allocation3 + $0x8] sm:$0xff] }
 0x7db   :  { %948 = vmatpush.msrb.mxu1 %v1264_v37  ;;  %v1283_v37 = vld [vmem:[#allocation6 + $0x50] sm:$0xff] }
 0x7dc   :  { %904 = vmatpush.msra.mxu0 %v1679_v57  ;;  %988 = vmatpush.msrb.mxu2 %v1646_v48  ;;  %v2064_v48 = vld [vmem:[%s2168_s3] ss:$0 sm:$0xff] }
 0x7dd   :  { %949 = vmatpush.msrb.mxu1 %v1265_v39 }
 0x7de   :  { %905 = vmatpush.msra.mxu0 %v1705_v20  ;;  %989 = vmatpush.msrb.mxu2 %v1653_v50  ;;  %v174_v50 = vadd.f32 %v2064_v48, %v2215_v49  ;;  %v1289_v49 = vld [vmem:[#allocation6 + $0x38] sm:$0xff] }
 0x7df   :  { %950 = vmatpush.msrb.mxu1 %v1266_v42  ;;  %v1284_v42 = vld [vmem:[#allocation8 + $0x48] sm:$0xff] }
 0x7e0   :  { %906 = vmatpush.msra.mxu0 %v1709_v22  ;;  %990 = vmatpush.msrb.mxu2 %v1660_v52 }
 0x7e1   :  { %951 = vmatpush.msrb.mxu1 %v1267_v44  ;;  %v1285_v44 = vld [vmem:[#allocation6 + $0x48] sm:$0xff] }
 0x7e2   :  { %907 = vmatpush.msra.mxu0 %v1711_v23  ;;  %991 = vmatpush.msrb.mxu2 %v1667_v54 }
 0x7e3   :  { %952 = vmatpush.msrb.mxu1 %v1268_v45  ;;  %v1286_v45 = vld [vmem:[#allocation8 + $0x40] sm:$0xff] }
 0x7e4   :  { %908 = vmatpush.msra.mxu0 %v2198_v16  ;;  %992 = vmatpush.msrb.mxu2 %v1674_v56 }
 0x7e5   :  { %953 = vmatpush.msrb.mxu1 %v1269_v46  ;;  %v1287_v46 = vld [vmem:[#allocation6 + $0x40] sm:$0xff] }
 0x7e6   :  { %909 = vmatpush.msra.mxu0 %v2209_v1  ;;  %993 = vmatpush.msrb.mxu2 %v1681_v58 }
 0x7e7   :  { %954 = vmatpush.msrb.mxu1 %v1270_v47  ;;  %v1288_v47 = vld [vmem:[#allocation8 + $0x38] sm:$0xff] }
 0x7e8   :  { %994 = vmatpush.msrb.mxu2 %v1687_v61 }
 0x7ea   :  { %995 = vmatpush.msrb.mxu2 %v1694_v63 }
 0x7ec   :  { %996 = vmatpush.msrb.mxu2 %v2210_v2 }
 0x7ee   :  { %997 = vmatpush.msrb.mxu2 %v2212_v6 }
 0x844   :  { %v632_v51 = vpop.f32.mrf.mxu0  ;;  %v675_v54 = vpop.f32.mrf.mxu1 }
 0x845   :  { %v635_v52 = vadd.f32 %v632_v51, %v174_v50  ;;  %v676_v58 = vadd.f32 %v1832_v32, %v675_v54  ;;  %v1290_v50 = vld [vmem:[#allocation8 + $0x30] sm:$0xff]  ;;  %v1294_v54 = vld [vmem:[#allocation6 + $0x18] sm:$0xff] }
 0x846   :  { %v1291_v51 = vld [vmem:[#allocation6 + $0x30] sm:$0xff] }
 0x847   :  { %v636_v53 = vmul.f32 %v635_v52, %v1598_v26  ;;  %v1292_v52 = vld [vmem:[#allocation6 + $0x28] sm:$0xff] }
 0x849   :  { %1219 = vtanh.f32 %v636_v53  ;;  %v1293_v53 = vld [vmem:[#allocation6 + $0x20] sm:$0xff] }
 0x84f   :  { %v1220_v55 = vpop.eup %1219 }
 0x850   :  { %v638_v56 = vadd.f32 1.0, %v1220_v55 }
 0x852   :  { %v695_v61 = vpop.f32.mrf.mxu2  ;;  %v639_v25 = vmul.f32 0.5, %v638_v56 }
 0x853   :  { %v698_v59 = vadd.f32 %v695_v61, %v676_v58 }
 0x854   :  { %v640_v19 = vsel %vm1592_vm4, %v1220_v55, %v639_v25 }
 0x855   :  { %v699_v28 = vmul.f32 %v698_v59, %v1598_v26  ;;  %642 = vrot.lane.b32.xlu0 %v640_v19, %s1433_s11  ;;  %v646_v5 = vmul.f32 %v640_v19, %v2020_v0 }
 0x857   :  { %1221 = vtanh.f32 %v699_v28 }
 0x85d   :  { %v1222_v60 = vpop.eup %1221 }
 0x85e   :  { %v701_v18 = vadd.f32 1.0, %v1222_v60 }
 0x860   :  { %v702_v29 = vmul.f32 0.5, %v701_v18 }
 0x862   :  { %v703_v33 = vsel %vm1592_vm4, %v1222_v60, %v702_v29 }
 0x863   :  { %705 = vrot.lane.b32.xlu1 %v703_v33, %s1433_s11  ;;  %v709_v7 = vmul.f32 %v703_v33, %v2025_v9  ;;  %v1276_v9 = vld [vmem:[#allocation8 + $0x68] sm:$0xff] }
 0x8c7   :  { %v643_v62 = vpop.permute.xlu0 %642 }
 0x8c8   :  { %v645_v34 = vmul.f32 %v643_v62, %v640_v19 }
 0x8ca   :  { %648 = vrot.lane.b32.xlu2 %v645_v34, %s1434_s12 }
 0x8d5   :  { %v706_v17 = vpop.permute.xlu1 %705 }
 0x8d6   :  { %v708_v31 = vmul.f32 %v706_v17, %v703_v33 }
 0x8d8   :  { %711 = vrot.lane.b32.xlu0 %v708_v31, %s1434_s12 }
 0x924   :  { %v649_v21 = vpop.permute.xlu2 %648 }
 0x925   :  { %v2080_v4 = vadd.f32 %v649_v21, %v646_v5 }
 0x927   :  { %1223 = vtanh.f32 %v2080_v4 }
 0x92d   :  { %v1224_v3 = vpop.eup %1223 }
 0x92e   :  { %654 = vrot.lane.b32.xlu1 %v1224_v3, %s1433_s11 }
 0x94a   :  { %v712_v8 = vpop.permute.xlu0 %711 }
 0x94b   :  { %v2085_v10 = vadd.f32 %v712_v8, %v709_v7 }
 0x94d   :  { %1225 = vtanh.f32 %v2085_v10 }
 0x953   :  { %v1226_v11 = vpop.eup %1225 }
 0x954   :  { %717 = vrot.lane.b32.xlu2 %v1226_v11, %s1433_s11 }
 0x9a0   :  { %v655_v27 = vpop.permute.xlu1 %654 }
 0x9a1   :  { %v657_v0 = vmul.f32 %v655_v27, %v640_v19 }
 0x9a3   :  { %739 = vmatmul.f32.vlgmr.msrb.gmra.mxu3 %v657_v0  ;;  %782 = vmatmul.f32.vlgmr.msrb.gmra.mxu0 %v657_v0 }
 0x9a4   :  { %1002 = vmatpush.msrb.mxu3 %v1272_v12  ;;  %1045 = vmatpush.msrb.mxu0 %v1273_v13  ;;  %v2217_v13 = vld [vmem:[#allocation25_spill] sm:$0xff] }
 0x9a6   :  { %1003 = vmatpush.msrb.mxu3 %v1274_v35  ;;  %1046 = vmatpush.msrb.mxu0 %v1275_v14 }
 0x9a8   :  { %1004 = vmatpush.msrb.mxu3 %v1276_v9  ;;  %1047 = vmatpush.msrb.mxu0 %v1277_v15 }
 0x9aa   :  { %1005 = vmatpush.msrb.mxu3 %v1278_v30  ;;  %1048 = vmatpush.msrb.mxu0 %v1279_v38 }
 0x9ac   :  { %1006 = vmatpush.msrb.mxu3 %v1280_v40  ;;  %1049 = vmatpush.msrb.mxu0 %v1281_v41 }
 0x9ae   :  { %v718_v43 = vpop.permute.xlu2 %717  ;;  %1007 = vmatpush.msrb.mxu3 %v1282_v36  ;;  %1050 = vmatpush.msrb.mxu0 %v1283_v37 }
 0x9af   :  { %v720_v39 = vmul.f32 %v718_v43, %v703_v33 }
 0x9b0   :  { %1008 = vmatpush.msrb.mxu3 %v1284_v42  ;;  %1051 = vmatpush.msrb.mxu0 %v1285_v44 }
 0x9b1   :  { %802 = vmatmul.f32.vlgmr.msra.gmra.mxu1 %v720_v39 }
 0x9b2   :  { %1009 = vmatpush.msrb.mxu3 %v1286_v45  ;;  %1065 = vmatpush.msra.mxu1 %v1272_v12 }
 0x9b3   :  { %1052 = vmatpush.msrb.mxu0 %v1287_v46 }
 0x9b4   :  { %1010 = vmatpush.msrb.mxu3 %v1288_v47  ;;  %1066 = vmatpush.msra.mxu1 %v1274_v35  ;;  %v180_v35 = vadd.f32 %v2064_v48, %v2217_v13 }
 0x9b5   :  { %1053 = vmatpush.msrb.mxu0 %v1289_v49 }
 0x9b6   :  { %1011 = vmatpush.msrb.mxu3 %v1290_v50  ;;  %1067 = vmatpush.msra.mxu1 %v1276_v9 }
 0x9b7   :  { %1054 = vmatpush.msrb.mxu0 %v1291_v51 }
 0x9b8   :  { %1012 = vmatpush.msrb.mxu3 %v1679_v57  ;;  %1068 = vmatpush.msra.mxu1 %v1278_v30  ;;  %v1295_v57 = vld [vmem:[#allocation8 + $0x28] sm:$0xff] }
 0x9b9   :  { %1055 = vmatpush.msrb.mxu0 %v1292_v52 }
 0x9ba   :  { %1013 = vmatpush.msrb.mxu3 %v1705_v20  ;;  %1069 = vmatpush.msra.mxu1 %v1280_v40 }
 0x9bb   :  { %1056 = vmatpush.msrb.mxu0 %v1293_v53 }
 0x9bc   :  { %1014 = vmatpush.msrb.mxu3 %v1709_v22  ;;  %1070 = vmatpush.msra.mxu1 %v1282_v36 }
 0x9bd   :  { %1057 = vmatpush.msrb.mxu0 %v1294_v54 }
 0x9be   :  { %1015 = vmatpush.msrb.mxu3 %v1711_v23  ;;  %1071 = vmatpush.msra.mxu1 %v1284_v42 }
 0x9bf   :  { %1058 = vmatpush.msrb.mxu0 %v1694_v63  ;;  %v2216_v63 = vld [vmem:[#allocation24_spill] sm:$0xff] }
 0x9c0   :  { %1016 = vmatpush.msrb.mxu3 %v2198_v16  ;;  %1072 = vmatpush.msra.mxu1 %v1286_v45 }
 0x9c1   :  { %1059 = vmatpush.msrb.mxu0 %v2210_v2  ;;  %v177_v2 = vadd.f32 %v2064_v48, %v2216_v63 }
 0x9c2   :  { %1017 = vmatpush.msrb.mxu3 %v2209_v1  ;;  %1073 = vmatpush.msra.mxu1 %v1288_v47 }
 0x9c3   :  { %1060 = vmatpush.msrb.mxu0 %v2212_v6 }
 0x9c4   :  { %1074 = vmatpush.msra.mxu1 %v1290_v50 }
 0x9c6   :  { %1075 = vmatpush.msra.mxu1 %v1295_v57 }
 0x9c8   :  { %1076 = vmatpush.msra.mxu1 %v1705_v20 }
 0x9ca   :  { %1077 = vmatpush.msra.mxu1 %v1709_v22 }
 0x9cc   :  { %1078 = vmatpush.msra.mxu1 %v1711_v23 }
 0x9ce   :  { %1079 = vmatpush.msra.mxu1 %v2198_v16 }
 0x9d0   :  { %1080 = vmatpush.msra.mxu1 %v2209_v1 }
 0xa20   :  { %v783_v58 = vpop.f32.mrf.mxu0 }
 0xa21   :  { %v784_v61 = vadd.f32 %v1832_v32, %v783_v58 }
 0xa26   :  { %v740_v55 = vpop.f32.mrf.mxu3 }
 0xa27   :  { %v743_v56 = vadd.f32 %v740_v55, %v177_v2 }
 0xa29   :  { %v744_v6 = vmul.f32 %v743_v56, %v1598_v26 }
 0xa2b   :  { %1227 = vtanh.f32 %v744_v6 }
 0xa2e   :  { %v803_v20 = vpop.f32.mrf.mxu1 }
 0xa2f   :  { %v806_v25 = vadd.f32 %v803_v20, %v784_v61 }
 0xa31   :  { %v1228_v22 = vpop.eup %1227  ;;  %v807_v23 = vmul.f32 %v806_v25, %v1598_v26  ;;  %v2218_v25 = vld [vmem:[#allocation26_spill] sm:$0xff] }
 0xa32   :  { %v746_v59 = vadd.f32 1.0, %v1228_v22 }
 0xa33   :  { %1229 = vtanh.f32 %v807_v23 }
 0xa34   :  { %v747_v16 = vmul.f32 0.5, %v746_v59 }
 0xa36   :  { %v748_v1 = vsel %vm1592_vm4, %v1228_v22, %v747_v16  ;;  %v183_v22 = vadd.f32 %v2064_v48, %v2218_v25 }
 0xa37   :  { %750 = vrot.lane.b32.xlu0 %v748_v1, %s1433_s11  ;;  %v754_v17 = vmul.f32 %v748_v1, %v2080_v4 }
 0xa39   :  { %v1230_v19 = vpop.eup %1229 }
 0xa3a   :  { %v809_v28 = vadd.f32 1.0, %v1230_v19 }
 0xa3c   :  { %v810_v60 = vmul.f32 0.5, %v809_v28 }
 0xa3e   :  { %v811_v18 = vsel %vm1592_vm4, %v1230_v19, %v810_v60 }
 0xa3f   :  { %813 = vrot.lane.b32.xlu1 %v811_v18, %s1433_s11  ;;  %v817_v3 = vmul.f32 %v811_v18, %v2085_v10 }
 0xaa9   :  { %v751_v29 = vpop.permute.xlu0 %750 }
 0xaaa   :  { %v753_v33 = vmul.f32 %v751_v29, %v748_v1 }
 0xaac   :  { %756 = vrot.lane.b32.xlu2 %v753_v33, %s1434_s12 }
 0xab1   :  { %v814_v62 = vpop.permute.xlu1 %813 }
 0xab2   :  { %v816_v34 = vmul.f32 %v814_v62, %v811_v18 }
 0xab4   :  { %819 = vrot.lane.b32.xlu0 %v816_v34, %s1434_s12 }
 0xb06   :  { %v757_v31 = vpop.permute.xlu2 %756 }
 0xb07   :  { %v759_v5 = vadd.f32 %v757_v31, %v754_v17 }
 0xb09   :  { %1231 = vtanh.f32 %v759_v5 }
 0xb0f   :  { %v1232_v21 = vpop.eup %1231 }
 0xb10   :  { %762 = vrot.lane.b32.xlu1 %v1232_v21, %s1433_s11 }
 0xb26   :  { %v820_v7 = vpop.permute.xlu0 %819 }
 0xb27   :  { %v822_v8 = vadd.f32 %v820_v7, %v817_v3 }
 0xb29   :  { %1233 = vtanh.f32 %v822_v8 }
 0xb2f   :  { %v1234_v11 = vpop.eup %1233 }
 0xb30   :  { %825 = vrot.lane.b32.xlu2 %v1234_v11, %s1433_s11 }
 0xb82   :  { %v763_v27 = vpop.permute.xlu1 %762 }
 0xb83   :  { %v765_v0 = vmul.f32 %v763_v27, %v748_v1 }
 0xb85   :  { %847 = vmatmul.f32.vlgmr.msra.gmra.mxu2 %v765_v0  ;;  %890 = vmatmul.f32.vlgmr.msra.gmra.mxu3 %v765_v0 }
 0xb8a   :  { %v826_v12 = vpop.permute.xlu2 %825 }
 0xb8b   :  { %v828_v4 = vmul.f32 %v826_v12, %v811_v18 }
 0xb8d   :  { %910 = vmatmul.f32.vlgmr.msra.gmra.mxu0 %v828_v4 }
 0xc08   :  { %v848_v14 = vpop.f32.mrf.mxu2  ;;  %v891_v9 = vpop.f32.mrf.mxu3 }
 0xc09   :  { %v851_v15 = vadd.f32 %v848_v14, %v180_v35  ;;  %v892_v10 = vadd.f32 %v1832_v32, %v891_v9 }
 0xc0a   :  { %v911_v30 = vpop.f32.mrf.mxu0 }
 0xc0b   :  { %v852_v38 = vmul.f32 %v851_v15, %v1598_v26  ;;  %v914_v40 = vadd.f32 %v911_v30, %v892_v10 }
 0xc0d   :  { %1235 = vtanh.f32 %v852_v38  ;;  %v915_v41 = vmul.f32 %v914_v40, %v1598_v26  ;;  %v1296_v38 = vld [vmem:[%s2171_s6] ss:$0 sm:$0xff] }
 0xc0f   :  { %1237 = vtanh.f32 %v915_v41 }
 0xc13   :  { %v1236_v43 = vpop.eup %1235 }
 0xc14   :  { %v854_v36 = vadd.f32 1.0, %v1236_v43 }
 0xc15   :  { %v1238_v37 = vpop.eup %1237 }
 0xc16   :  { %v855_v39 = vmul.f32 0.5, %v854_v36  ;;  %v917_v42 = vadd.f32 1.0, %v1238_v37 }
 0xc18   :  { %v856_v44 = vsel %vm1592_vm4, %v1236_v43, %v855_v39  ;;  %v918_v45 = vmul.f32 0.5, %v917_v42 }
 0xc19   :  { %858 = vrot.lane.b32.xlu0 %v856_v44, %s1433_s11  ;;  %v862_v52 = vmul.f32 %v856_v44, %v759_v5 }
 0xc1a   :  { %v919_v46 = vsel %vm1592_vm4, %v1238_v37, %v918_v45 }
 0xc1b   :  { %921 = vrot.lane.b32.xlu1 %v919_v46, %s1433_s11  ;;  %v925_v63 = vmul.f32 %v919_v46, %v822_v8 }
 0xc8b   :  { %v859_v47 = vpop.permute.xlu0 %858 }
 0xc8c   :  { %v861_v49 = vmul.f32 %v859_v47, %v856_v44  ;;  %v1123_v47 = vld [vmem:[#allocation9 + $0x78] sm:$0xff] }
 0xc8d   :  { %v922_v50 = vpop.permute.xlu1 %921  ;;  %1128 = vmatpush.msra.mxu2 %v1123_v47 }
 0xc8e   :  { %v924_v51 = vmul.f32 %v922_v50, %v919_v46  ;;  %864 = vrot.lane.b32.xlu2 %v861_v49, %s1434_s12  ;;  %v1122_v49 = vld [vmem:[#allocation9 + $0x70] sm:$0xff]  ;;  %v1121_v50 = vld [vmem:[#allocation9 + $0x68] sm:$0xff] }
 0xc8f   :  { %1129 = vmatpush.msra.mxu2 %v1122_v49 }
 0xc90   :  { %927 = vrot.lane.b32.xlu0 %v924_v51, %s1434_s12  ;;  %v1120_v51 = vld [vmem:[#allocation9 + $0x60] sm:$0xff] }
 0xc91   :  { %1130 = vmatpush.msra.mxu2 %v1121_v50 }
 0xc93   :  { %1131 = vmatpush.msra.mxu2 %v1120_v51 }
 0xce8   :  { %v865_v53 = vpop.permute.xlu2 %864 }
 0xce9   :  { %v867_v54 = vadd.f32 %v865_v53, %v862_v52  ;;  %v1118_v52 = vld [vmem:[#allocation9 + $0x50] sm:$0xff]  ;;  %v1117_v53 = vld [vmem:[#allocation9 + $0x48] sm:$0xff] }
 0xceb   :  { %1239 = vtanh.f32 %v867_v54 }
 0xcf1   :  { %v1240_v57 = vpop.eup %1239 }
 0xcf2   :  { %870 = vrot.lane.b32.xlu1 %v1240_v57, %s1433_s11  ;;  %v1114_v57 = vld [vmem:[#allocation9 + $0x30] sm:$0xff] }
 0xd02   :  { %v928_v2 = vpop.permute.xlu0 %927 }
 0xd03   :  { %v930_v55 = vadd.f32 %v928_v2, %v925_v63  ;;  %v1113_v63 = vld [vmem:[#allocation9 + $0x28] sm:$0xff]  ;;  %v1112_v2 = vld [vmem:[#allocation9 + $0x20] sm:$0xff] }
 0xd05   :  { %1241 = vtanh.f32 %v930_v55 }
 0xd0b   :  { %v1242_v56 = vpop.eup %1241 }
 0xd0c   :  { %933 = vrot.lane.b32.xlu2 %v1242_v56, %s1433_s11 }
 0xd64   :  { %v871_v6 = vpop.permute.xlu1 %870 }
 0xd65   :  { %v873_v58 = vmul.f32 %v871_v6, %v856_v44  ;;  %v1111_v6 = vld [vmem:[#allocation9 + $0x18] sm:$0xff] }
 0xd66   :  { %v934_v61 = vpop.permute.xlu2 %933 }
 0xd67   :  { %v936_v20 = vmul.f32 %v934_v61, %v919_v46  ;;  %955 = vmatmul.f32.vlgmr.msrb.gmra.mxu1 %v873_v58  ;;  %998 = vmatmul.f32.vlgmr.msrb.gmra.mxu2 %v873_v58  ;;  %v1110_v61 = vld [vmem:[#allocation9 + $0x10] sm:$0xff] }
 0xd69   :  { %1018 = vmatmul.f32.vlgmr.msrb.gmra.mxu3 %v936_v20  ;;  %v1109_v20 = vld [vmem:[#allocation9 + $0x8] sm:$0xff] }
 0xde4   :  { %v956_v23 = vpop.f32.mrf.mxu1 }
 0xde5   :  { %v959_v59 = vadd.f32 %v956_v23, %v183_v22  ;;  %v1108_v22 = vld [vmem:[#allocation9] sm:$0xff] }
 0xde7   :  { %v960_v16 = vmul.f32 %v959_v59, %v1598_v26 }
 0xde9   :  { %1243 = vtanh.f32 %v960_v16  ;;  %v1190_v16 = vld [vmem:[%s2173_s8] ss:$0 sm:$0xff] }
 0xdea   :  { %v999_v1 = vpop.f32.mrf.mxu2 }
 0xdeb   :  { %v1000_v19 = vadd.f32 %v1832_v32, %v999_v1 }
 0xdec   :  { %v1019_v28 = vpop.f32.mrf.mxu3 }
 0xded   :  { %v1022_v60 = vadd.f32 %v1019_v28, %v1000_v19 }
 0xdef   :  { %v1244_v18 = vpop.eup %1243  ;;  %v1023_v29 = vmul.f32 %v1022_v60, %v1598_v26 }
 0xdf0   :  { %v962_v33 = vadd.f32 1.0, %v1244_v18 }
 0xdf1   :  { %1245 = vtanh.f32 %v1023_v29 }
 0xdf2   :  { %v963_v62 = vmul.f32 0.5, %v962_v33 }
 0xdf4   :  { %v964_v34 = vsel %vm1592_vm4, %v1244_v18, %v963_v62 }
 0xdf5   :  { %966 = vrot.lane.b32.xlu0 %v964_v34, %s1433_s11  ;;  %v970_v8 = vmul.f32 %v964_v34, %v867_v54  ;;  %v1115_v54 = vld [vmem:[#allocation9 + $0x38] sm:$0xff] }
 0xdf7   :  { %v1246_v48 = vpop.eup %1245 }
 0xdf8   :  { %v1025_v17 = vadd.f32 1.0, %v1246_v48 }
 0xdfa   :  { %v1026_v31 = vmul.f32 0.5, %v1025_v17 }
 0xdfc   :  { %v1027_v5 = vsel %vm1592_vm4, %v1246_v48, %v1026_v31 }
 0xdfd   :  { %1029 = vrot.lane.b32.xlu1 %v1027_v5, %s1433_s11  ;;  %v1033_v12 = vmul.f32 %v1027_v5, %v930_v55 }
 0xe67   :  { %v967_v32 = vpop.permute.xlu0 %966 }
 0xe68   :  { %v969_v21 = vmul.f32 %v967_v32, %v964_v34 }
 0xe6a   :  { %972 = vrot.lane.b32.xlu2 %v969_v21, %s1434_s12 }
 0xe6f   :  { %v1030_v3 = vpop.permute.xlu1 %1029 }
 0xe70   :  { %v1032_v7 = vmul.f32 %v1030_v3, %v1027_v5 }
 0xe72   :  { %1035 = vrot.lane.b32.xlu0 %v1032_v7, %s1434_s12 }
 0xec4   :  { %v973_v11 = vpop.permute.xlu2 %972 }
 0xec5   :  { %v975_v27 = vadd.f32 %v973_v11, %v970_v8 }
 0xec7   :  { %1247 = vtanh.f32 %v975_v27 }
 0xecd   :  { %v1248_v0 = vpop.eup %1247 }
 0xece   :  { %978 = vrot.lane.b32.xlu1 %v1248_v0, %s1433_s11 }
 0xee4   :  { %v1036_v4 = vpop.permute.xlu0 %1035 }
 0xee5   :  { %v1038_v13 = vadd.f32 %v1036_v4, %v1033_v12 }
 0xee7   :  { %1249 = vtanh.f32 %v1038_v13 }
 0xeed   :  { %v1250_v35 = vpop.eup %1249 }
 0xeee   :  { %1041 = vrot.lane.b32.xlu2 %v1250_v35, %s1433_s11 }
 0xf40   :  { %v979_v14 = vpop.permute.xlu1 %978 }
 0xf41   :  { %v981_v9 = vmul.f32 %v979_v14, %v964_v34 }
 0xf43   :  { %1061 = vmatmul.f32.vlgmr.msrb.gmra.mxu0 %v981_v9 }
 0xf48   :  { %v1042_v15 = vpop.permute.xlu2 %1041 }
 0xf49   :  { %v1044_v10 = vmul.f32 %v1042_v15, %v1027_v5 }
 0xf4b   :  { %1081 = vmatmul.f32.vlgmr.msra.gmra.mxu1 %v1044_v10 }
 0xfc0   :  { %v1062_v30 = vpop.f32.mrf.mxu0 }
 0xfc1   :  { %v1063_v40 = vadd.f32 %v1296_v38, %v1062_v30 }
 0xfc8   :  { %v1082_v41 = vpop.f32.mrf.mxu1 }
 0xfc9   :  { %v1085_v43 = vadd.f32 %v1082_v41, %v1063_v40 }
 0xfcb   :  { %v1086_v36 = vmul.f32 %v1085_v43, %v1598_v26  ;;  %v1119_v26 = vld [vmem:[#allocation9 + $0x58] sm:$0xff] }
 0xfcc   :  { %1132 = vmatpush.msra.mxu2 %v1119_v26 }
 0xfcd   :  { %1251 = vtanh.f32 %v1086_v36 }
 0xfce   :  { %1133 = vmatpush.msra.mxu2 %v1118_v52 }
 0xfd0   :  { %1134 = vmatpush.msra.mxu2 %v1117_v53 }
 0xfd2   :  { %1135 = vmatpush.msra.mxu2 %v1116_v24 }
 0xfd3   :  { %v1252_v37 = vpop.eup %1251 }
 0xfd4   :  { %v1088_v39 = vadd.f32 1.0, %v1252_v37  ;;  %1136 = vmatpush.msra.mxu2 %v1115_v54 }
 0xfd6   :  { %v1089_v42 = vmul.f32 0.5, %v1088_v39  ;;  %1137 = vmatpush.msra.mxu2 %v1114_v57 }
 0xfd8   :  { %v1090_v44 = vsel %vm1592_vm4, %v1252_v37, %v1089_v42  ;;  %1138 = vmatpush.msra.mxu2 %v1113_v63 }
 0xfd9   :  { %1092 = vrot.lane.b32.xlu0 %v1090_v44, %s1433_s11  ;;  %v1096_v55 = vmul.f32 %v1090_v44, %v1038_v13 }
 0xfda   :  { %1139 = vmatpush.msra.mxu2 %v1112_v2 }
 0xfdc   :  { %1140 = vmatpush.msra.mxu2 %v1111_v6 }
 0xfde   :  { %1141 = vmatpush.msra.mxu2 %v1110_v61 }
 0xfe0   :  { %1142 = vmatpush.msra.mxu2 %v1109_v20 }
 0xfe2   :  { %1143 = vmatpush.msra.mxu2 %v1108_v22 }
0x104b   :  { %v1093_v45 = vpop.permute.xlu0 %1092 }
0x104c   :  { %v1095_v46 = vmul.f32 %v1093_v45, %v1090_v44 }
0x104e   :  { %1098 = vrot.lane.b32.xlu1 %v1095_v46, %s1434_s12 }
0x10c0   :  { %v1099_v56 = vpop.permute.xlu1 %1098 }
0x10c1   :  { %v1101_v58 = vadd.f32 %v1099_v56, %v1096_v55 }
0x10c3   :  { %1253 = vtanh.f32 %v1101_v58 }
0x10c9   :  { %v1254_v25 = vpop.eup %1253 }
0x10ca   :  { %1104 = vrot.lane.b32.xlu2 %v1254_v25, %s1433_s11 }
0x1124   :  { %v1105_v23 = vpop.permute.xlu2 %1104 }
0x1125   :  { %v1107_v59 = vmul.f32 %v1105_v23, %v1090_v44 }
0x1127   :  { %1144 = vmatmul.f32.vlgmr.msra.gmra.mxu2 %v1107_v59 }
0x11aa   :  { %v1145_v1 = vpop.f32.mrf.mxu2 }
0x11ab   :  { %v1146_v19 = vadd.f32 %v1190_v16, %v1145_v1 }
0x11ad   :  { %1148 = vst [vmem:[#allocation11] sm:$0xff] %v1146_v19 }
0x11ae   :  { %1159 = dma.vmem_to_hbm [thread:$0]  %s1155_s29, 128, %s1157_s10, [#allocation5]  }
0x11af   :  { %1423 = dma.done.wait [#allocation5], 128  }
0x11b0   :  { %1424 = vsyncadd [#allocation5], 4294967168 }
0x11b1   :  { %1164 = vsyncpa [#allocation4], 1 }
0x11b2   :  { %1165 = vsyncpa [#allocation7], 1 }
0x11b3   :  { %1166 = vsyncpa [#allocation10], 1 }
0x11b4   :  { %1167 = vsyncpa [#allocation5], 1 }

</bundles_post_ra>
